<compile_context>
chip_gen: v6e
topology: v6e:2x2x1
jax: 0.10.0
libtpu: 0.0.40
codegen_flags: <defaults>
</compile_context>

<pallas_src>
import jax
import jax.numpy as jnp
from jax.experimental import pallas as pl
from jax.experimental.pallas import tpu as pltpu


# ----------------------------------------------------------------------------
# Pallas kernel: GATv2Conv(in=64, out=1, heads=1), tiled over target nodes.
# ----------------------------------------------------------------------------
def _gatv2_kernel(scal_ref, xl_ref, red_ref, xr_ref, adj_ref, out_ref):
    # scal_ref : SMEM (2,)  f32   [att, bias]                  (scalar prefetch)
    # xl_ref   : VMEM (Np, 1) f32 x@wl + bl for all source nodes (resident)
    # red_ref  : VMEM (8, Np) f32 rows = [ones, xl^T, 0, ...]    (resident)
    # xr_ref   : VMEM (1, Ti) f32 x@wr + br for this target block
    # adj_ref  : VMEM (Np, Ti) i8 adj[j, i] != 0 iff edge j -> i (incl. self loop)
    # out_ref  : VMEM (1, Ti) f32 lane-dense output row for this target block
    att = scal_ref[0]
    bias = scal_ref[1]

    # Pairwise pre-activation  s[j, i] = xl[j] + xr[i]   (source j on sublanes).
    s = xl_ref[...] + xr_ref[...]                       # (Np, Ti)
    s = jnp.maximum(s, 0.2 * s)                         # LeakyReLU(0.2): mul + max
    e = s * att                                         # attention logits

    # Masked logits; non-neighbours -> -1e30 (compare in stored int8 dtype).
    # Every real target column has >= 1 neighbour (self loop), so m is finite
    # and masked entries underflow to exactly 0 in exp(e - m).
    e = jnp.where(adj_ref[...] != 0, e, jnp.float32(-1e30))

    m = jnp.max(e, axis=0, keepdims=True)               # (1, Ti) sublane reduce (XLU)
    p = jnp.exp(e - m)                                  # (Np, Ti) EUP

    # Fused softmax denominator + weighted numerator in one MXU matmul:
    #   nd[0, i] = sum_j p[j, i]          (denominator)
    #   nd[1, i] = sum_j xl[j] * p[j, i]  (numerator)
    nd = jnp.dot(red_ref[...], p, preferred_element_type=jnp.float32)  # (8, Ti)
    out_ref[...] = nd[1:2, :] / nd[0:1, :] + bias


def _round_up(v, m):
    return ((v + m - 1) // m) * m


def _pick_tile(n_pad):
    """Largest 128-multiple tile dividing n_pad; keep >=2 blocks on 2-TC chips."""
    try:
        kind = jax.devices()[0].device_kind.lower()
        two_cores = "v7" in kind                      # v7x: 2 TensorCores per chip
    except Exception:  # pragma: no cover - defensive
        two_cores = False
    cap = n_pad // 2 if (two_cores and n_pad >= 256) else n_pad
    cap = min(cap, 1024)                              # bound the adjacency j-stream block
    best = 128
    t = 128
    while t <= cap:
        if n_pad % t == 0:
            best = t
        t += 128
    return best


def gatv2_conv_pallas(x, adjT, wl, bl, wr, br, att, bias, *, tile_i=None):
    """GATv2Conv(F -> 1, heads=1). x: [N, F]; adjT: [N, N], adjT[j, i] != 0 iff edge j->i."""
    N, F = x.shape
    x32 = x.astype(jnp.float32)

    # ---- hoisted, loop-invariant projections (computed once, outside the grid) ----
    xl = x32 @ wl.reshape(F, 1).astype(jnp.float32) + bl.reshape(1, 1)   # (N, 1)
    xr = (x32 @ wr.reshape(F, 1).astype(jnp.float32) + br.reshape(1, 1)).reshape(1, N)

    # Pad N up to a multiple of 128 with no-edge rows/cols (lane-dense tiles, any N).
    n_pad = _round_up(max(N, 128), 128)
    pad = n_pad - N
    if pad:
        xl = jnp.pad(xl, ((0, pad), (0, 0)))
        xr = jnp.pad(xr, ((0, 0), (0, pad)))
        adjT = jnp.pad(adjT, ((0, pad), (0, pad)))

    if tile_i is None:
        tile_i = _pick_tile(n_pad)
    assert n_pad % tile_i == 0 and tile_i % 128 == 0

    # Reduction matrix for the fused MXU dot: row0 = ones (denominator),
    # row1 = xl^T (numerator), rows 2..7 zero padding for a clean 8-sublane layout.
    red = jnp.zeros((8, n_pad), jnp.float32)
    red = red.at[0, :].set(1.0)
    red = red.at[1, :].set(xl[:, 0])

    adj_i8 = (adjT != 0).astype(jnp.int8)             # O(N^2) term at 1 byte/elem
    scalars = jnp.concatenate([att.reshape(-1), bias.reshape(-1)]).astype(jnp.float32)
    xl = xl.astype(jnp.float32)
    xr = xr.astype(jnp.float32)

    # VMEM estimate (residents + double-buffered streams); raise the scoped limit
    # only when it would exceed the smallest default (v5e: 16 MiB).
    est = (n_pad * 4 + 8 * n_pad * 4
           + 2 * (tile_i * 4 + n_pad * tile_i + tile_i * 4))
    vmem_lim = int(min(est * 2, 64 * 1024 * 1024)) if est > 12 * 1024 * 1024 else None

    out_row = pl.pallas_call(
        _gatv2_kernel,
        out_shape=jax.ShapeDtypeStruct((1, n_pad), jnp.float32),
        grid_spec=pltpu.PrefetchScalarGridSpec(
            num_scalar_prefetch=1,
            grid=(n_pad // tile_i,),
            in_specs=[
                pl.BlockSpec((n_pad, 1), lambda i, s: (0, 0)),        # xl   (resident)
                pl.BlockSpec((8, n_pad), lambda i, s: (0, 0)),        # red  (resident)
                pl.BlockSpec((1, tile_i), lambda i, s: (0, i)),       # xr   target block
                pl.BlockSpec((n_pad, tile_i), lambda i, s: (0, i)),   # adj  j-major block
            ],
            out_specs=pl.BlockSpec((1, tile_i), lambda i, s: (0, i)),
        ),
        compiler_params=pltpu.CompilerParams(
            dimension_semantics=("parallel",),        # v7x: 2 TCs split target blocks
            vmem_limit_bytes=vmem_lim,
        ),
    )(scalars, xl, red, xr, adj_i8)

    return out_row[0, :N].reshape(N, 1)               # [N, heads*out_channels]


# ----------------------------------------------------------------------------
# Parameter init (deterministic, PyG GATv2Conv-shaped) + GNN forward glue.
# ----------------------------------------------------------------------------
def _glorot(key, shape):
    lim = jnp.sqrt(6.0 / (shape[0] + shape[-1]))
    return jax.random.uniform(key, shape, jnp.float32, -lim, lim)


def init_gatv2_params(key, in_ch, out_ch, heads):
    k = jax.random.split(key, 6)
    hc = heads * out_ch
    return dict(
        wl=_glorot(k[0], (in_ch, hc)),
        bl=0.1 * jax.random.normal(k[1], (hc,), jnp.float32),
        wr=_glorot(k[2], (in_ch, hc)),
        br=0.1 * jax.random.normal(k[3], (hc,), jnp.float32),
        att=_glorot(k[4], (heads, out_ch)).reshape(hc),
        bias=0.1 * jax.random.normal(k[5], (hc,), jnp.float32),
    )


def init_gnn_params(key, num_of_class):
    k = jax.random.split(key, 4)
    return dict(
        init_conv=init_gatv2_params(k[0], 64, 1, 1),
        # Initialized per __init__ but unused by the reference forward:
        gat=init_gatv2_params(k[1], 64, 1024, 16),
        out=dict(w=_glorot(k[2], (1024 * 16, num_of_class)),
                 b=0.1 * jax.random.normal(k[3], (num_of_class,), jnp.float32)),
    )


def gnn_forward(params, x, edge_index):
    # Dense adjacency in source-major orientation adjT[j, i] = edge j->i,
    # plus self loops (PyG add_self_loops=True) — required so every target
    # column has at least one unmasked entry in the softmax.
    N = x.shape[0]
    src, dst = edge_index[0], edge_index[1]
    adjT = jnp.zeros((N, N), jnp.float32).at[src, dst].set(1.0)
    adjT = adjT.at[jnp.arange(N), jnp.arange(N)].set(1.0)
    p = params["init_conv"]
    # TODO(synk): reference forward references undefined `edge_list` / `z`;
    # implemented as `return self.init_conv(x, edge_index)`.
    return gatv2_conv_pallas(x, adjT, p["wl"], p["bl"], p["wr"], p["br"],
                             p["att"], p["bias"])


# Pure-JAX reference (same math) for a correctness check.
def gatv2_ref(x, adj, wl, bl, wr, br, att, bias):
    xl = x @ wl + bl                                   # [N, 1]
    xr = x @ wr + br                                   # [N, 1]
    s = xr[:, None, :] + xl[None, :, :]                # [N, N, 1]
    s = jnp.where(s >= 0.0, s, 0.2 * s)
    e = jnp.sum(s * att[None, None, :], axis=-1)       # [N, N]
    e = jnp.where(adj > 0.0, e, -jnp.inf)
    alpha = jax.nn.softmax(e, axis=1)
    alpha = jnp.where(adj > 0.0, alpha, 0.0)
    return alpha @ xl + bias


if __name__ == "__main__":
    N, F_IN, NUM_CLASS = 256, 64, 10
    key = jax.random.PRNGKey(0)
    kx, kp = jax.random.split(key)

    x = jax.random.normal(kx, (N, F_IN), jnp.float32)
    # directed ring graph both ways: E = 2N edges, no duplicates
    idx = jnp.arange(N)
    src = jnp.concatenate([idx, (idx + 1) % N])
    dst = jnp.concatenate([(idx + 1) % N, idx])
    edge_index = jnp.stack([src, dst]).astype(jnp.int32)   # [2, 2N]

    params = init_gnn_params(kp, NUM_CLASS)

    out = gnn_forward(params, x, edge_index)
    out = jax.block_until_ready(out)

    # check against pure-JAX reference (target-major adjacency)
    adj = jnp.zeros((N, N), jnp.float32).at[dst, src].set(1.0)
    adj = adj.at[idx, idx].set(1.0)
    p = params["init_conv"]
    ref = gatv2_ref(x, adj, p["wl"], p["bl"], p["wr"], p["br"], p["att"], p["bias"])
    assert out.shape == (N, 1)
    assert jnp.allclose(out, ref, atol=2e-3, rtol=2e-3), (out, ref)

    print("KERNEL_OK")
</pallas_src>

<mosaic_0001>
module attributes {stable_mosaic.version = 11 : i64} {
  func.func @_gatv2_kernel(%arg0: i32, %arg1: memref<2xf32, #tpu.memory_space<smem>>, %arg2: memref<256x1xf32, #tpu.memory_space<vmem>>, %arg3: memref<8x256xf32, #tpu.memory_space<vmem>>, %arg4: memref<1x256xf32, #tpu.memory_space<vmem>>, %arg5: memref<256x256xi8, #tpu.memory_space<vmem>>, %arg6: memref<1x256xf32, #tpu.memory_space<vmem>>) attributes {dimension_semantics = [#tpu.dimension_semantics<parallel>], iteration_bounds = array<i64: 1>, scalar_prefetch = 1 : i64, scratch_operands = 0 : i64, tpu.core_type = #tpu.core_type<tc>, window_params = [{pipeline_mode = #tpu.pipeline_mode<synchronous>, transform_indices = @transform_0, window_bounds = array<i64: 256, 1>}, {pipeline_mode = #tpu.pipeline_mode<synchronous>, transform_indices = @transform_1, window_bounds = array<i64: 8, 256>}, {transform_indices = @transform_2, window_bounds = array<i64: 1, 256>}, {transform_indices = @transform_3, window_bounds = array<i64: 256, 256>}, {transform_indices = @transform_4, window_bounds = array<i64: 1, 256>}]} {
    %c0 = arith.constant 0 : index
    %0 = memref.load %arg1[%c0] : memref<2xf32, #tpu.memory_space<smem>>
    %c1 = arith.constant 1 : index
    %1 = memref.load %arg1[%c1] : memref<2xf32, #tpu.memory_space<smem>>
    %c0_0 = arith.constant 0 : index
    %c0_1 = arith.constant 0 : index
    %2 = vector.load %arg2[%c0_0, %c0_1] : memref<256x1xf32, #tpu.memory_space<vmem>>, vector<256x1xf32>
    %c0_2 = arith.constant 0 : index
    %c0_3 = arith.constant 0 : index
    %3 = vector.load %arg4[%c0_2, %c0_3] : memref<1x256xf32, #tpu.memory_space<vmem>>, vector<1x256xf32>
    %4 = vector.broadcast %2 : vector<256x1xf32> to vector<256x256xf32>
    %5 = vector.broadcast %3 : vector<1x256xf32> to vector<256x256xf32>
    %6 = arith.addf %4, %5 : vector<256x256xf32>
    %cst = arith.constant 2.000000e-01 : f32
    %7 = vector.broadcast %cst : f32 to vector<256x256xf32>
    %8 = arith.mulf %7, %6 : vector<256x256xf32>
    %9 = arith.maximumf %6, %8 : vector<256x256xf32>
    %10 = vector.broadcast %0 : f32 to vector<256x256xf32>
    %11 = arith.mulf %9, %10 : vector<256x256xf32>
    %c0_4 = arith.constant 0 : index
    %c0_5 = arith.constant 0 : index
    %12 = vector.load %arg5[%c0_4, %c0_5] : memref<256x256xi8, #tpu.memory_space<vmem>>, vector<256x256xi8>
    %c0_i8 = arith.constant 0 : i8
    %13 = vector.broadcast %c0_i8 : i8 to vector<256x256xi8>
    %14 = arith.cmpi ne, %12, %13 : vector<256x256xi8>
    %cst_6 = arith.constant -1.000000e+30 : f32
    %15 = vector.broadcast %cst_6 : f32 to vector<256x256xf32>
    %16 = arith.select %14, %11, %15 : vector<256x256xi1>, vector<256x256xf32>
    %cst_7 = arith.constant dense<0xFF800000> : vector<256xf32>
    %17 = vector.multi_reduction <maximumf>, %16, %cst_7 [0] : vector<256x256xf32> to vector<256xf32>
    %18 = vector.shape_cast %17 : vector<256xf32> to vector<1x256xf32>
    %19 = vector.broadcast %18 : vector<1x256xf32> to vector<256x256xf32>
    %20 = arith.subf %16, %19 : vector<256x256xf32>
    %21 = math.exp %20 : vector<256x256xf32>
    %c0_8 = arith.constant 0 : index
    %c0_9 = arith.constant 0 : index
    %22 = vector.load %arg3[%c0_8, %c0_9] : memref<8x256xf32, #tpu.memory_space<vmem>>, vector<8x256xf32>
    %cst_10 = arith.constant dense<0.000000e+00> : vector<8x256xf32>
    %23 = tpu.matmul %22, %21, %cst_10 {dimension_numbers = #tpu.dot_dimension_numbers<[1], [0], [0], [1], [0, 0, 1, 1], [], []>} : vector<8x256xf32>, vector<256x256xf32>, vector<8x256xf32> -> vector<8x256xf32>
    %24 = vector.extract_strided_slice %23 {offsets = [1, 0], sizes = [1, 256], strides = [1, 1]} : vector<8x256xf32> to vector<1x256xf32>
    %25 = vector.extract_strided_slice %23 {offsets = [0, 0], sizes = [1, 256], strides = [1, 1]} : vector<8x256xf32> to vector<1x256xf32>
    %26 = arith.divf %24, %25 : vector<1x256xf32>
    %27 = vector.broadcast %1 : f32 to vector<1x256xf32>
    %28 = arith.addf %26, %27 : vector<1x256xf32>
    %c0_11 = arith.constant 0 : index
    %c0_12 = arith.constant 0 : index
    %29 = vector.load %arg6[%c0_11, %c0_12] : memref<1x256xf32, #tpu.memory_space<vmem>>, vector<1x256xf32>
    tpu.vector_store %arg6[%c0_11, %c0_12], %28 {strides = array<i32>} : memref<1x256xf32, #tpu.memory_space<vmem>>, vector<1x256xf32>,
    return
  }
  func.func @transform_0(%arg0: i32, %arg1: memref<2xf32, #tpu.memory_space<smem>>) -> (i32, i32) {
    %c0_i32 = arith.constant 0 : i32
    %c0_i32_0 = arith.constant 0 : i32
    %c0_i32_1 = arith.constant 0 : i32
    return %c0_i32, %c0_i32_0 : i32, i32
  }
  func.func @transform_1(%arg0: i32, %arg1: memref<2xf32, #tpu.memory_space<smem>>) -> (i32, i32) {
    %c0_i32 = arith.constant 0 : i32
    %c0_i32_0 = arith.constant 0 : i32
    %c0_i32_1 = arith.constant 0 : i32
    return %c0_i32, %c0_i32_0 : i32, i32
  }
  func.func @transform_2(%arg0: i32, %arg1: memref<2xf32, #tpu.memory_space<smem>>) -> (i32, i32) {
    %c0_i32 = arith.constant 0 : i32
    %c0_i32_0 = arith.constant 0 : i32
    return %c0_i32, %arg0 : i32, i32
  }
  func.func @transform_3(%arg0: i32, %arg1: memref<2xf32, #tpu.memory_space<smem>>) -> (i32, i32) {
    %c0_i32 = arith.constant 0 : i32
    %c0_i32_0 = arith.constant 0 : i32
    return %c0_i32, %arg0 : i32, i32
  }
  func.func @transform_4(%arg0: i32, %arg1: memref<2xf32, #tpu.memory_space<smem>>) -> (i32, i32) {
    %c0_i32 = arith.constant 0 : i32
    %c0_i32_0 = arith.constant 0 : i32
    return %c0_i32, %arg0 : i32, i32
  }
}

</mosaic_0001>

<bundles_post_ra>
// kernel: tpu_custom_call.1
= control target key start
LH: loop header
LB: loop body
LE: loop exit
PB: predicated region body
PF: predicated region fallthrough
CT: control target
= control target key end

     0   :  { %s3114_s0 = inlined_call_operand.vmem [shape: f32[2], index: 0, kind: input, shape index: {}]   ;;  %s3115_s1 = inlined_call_operand.vmem [shape: f32[256,1], index: 1, kind: input, shape index: {}]   ;;  %s3116_s2 = inlined_call_operand.vmem [shape: f32[8,256], index: 2, kind: input, shape index: {}]   ;;  %s3117_s3 = inlined_call_operand.vmem [shape: f32[1,256], index: 3, kind: input, shape index: {}]   ;;  %s3118_s4 = inlined_call_operand.vmem [shape: s8[256,256], index: 4, kind: input, shape index: {}]   ;;  %s3119_s5 = inlined_call_operand.hbm [shape: f32[1,256], index: 5, kind: output, shape index: {}]  }
   0x1   :  { %s10_s20 = sshll.u32 %s3114_s0, 4  ;;  %s11_s20 = int_to_ptr.vmem [resolvable:$true] %s10_s20 }
   0x2   :  { %s1451_s21 = scalar_lea.vmem %s11_s20, 16  ;;  %p1456_p1 = scmp.lt.s32.totalorder %s11_s20, %s11_s20 }
   0x3   :  { %p1452_p0 = scmp.ne.s32.totalorder %s11_s20, %s1451_s21  ;;  %p1457_p2 = scmp.lt.s32.totalorder %s1451_s21, %s1451_s21 }
   0x5   :  { %p1458_p3 = por %p1457_p2, %p1456_p1 }
   0x7   :  { %p1459_p4 = pnand %p1458_p3, %p1452_p0 }
   0x9   :  { %1462 = shalt.err (!%p1459_p4)  }
   0xa   :  { %s1487_s22 = smov [#allocation3]  }
   0xb   :  { %13 = dma.vmem_to_smem %s11_s20, 16, %s1487_s22, [#allocation2] }
   0xc   :  { %1483 = dma.done.wait [#allocation2], 16 }
   0xd   :  { %1484 = vsyncadd [#allocation2], 4294967280 }
   0xe   :  { %15 = sfence }
   0xf   :  { %v31_v0 = vld [vmem:[%s3115_s1 + $0x10] sm:$0xff]  ;;  %v29_v1 = vld [vmem:[%s3115_s1] sm:$0xff]  ;;  %v3124_v2 = vmov 0   ;;  %v32_v3 = vld [vmem:[%s3115_s1 + $0x18] sm:$0xff] }
  0x10   :  { %1318 = vset.pattern.permute.xlu1 %v3124_v2  ;;  %1317 = vset.pattern.permute.xlu0 %v3124_v2  ;;  %v30_v4 = vld [vmem:[%s3115_s1 + $0x8] sm:$0xff]  ;;  %v33_v6 = vld [vmem:[%s3115_s1 + $0x20] sm:$0xff]  ;;  %v36_v7 = vld [vmem:[%s3115_s1 + $0x38] sm:$0xff] }
  0x11   :  { %74 = vperm.xlu1 %1318, %v31_v0   ;;  %64 = vperm.xlu0 %1317, %v29_v1   ;;  %v34_v5 = vld [vmem:[%s3115_s1 + $0x28] sm:$0xff]  ;;  %v35_v8 = vld [vmem:[%s3115_s1 + $0x30] sm:$0xff] }
  0x15   :  { %79 = vperm.xlu1 %1318, %v32_v3   ;;  %69 = vperm.xlu0 %1317, %v30_v4  }
  0x19   :  { %89 = vperm.xlu1 %1318, %v34_v5   ;;  %84 = vperm.xlu0 %1317, %v33_v6  }
  0x1a   :  { %16 = vsyncpa [#allocation5], 0  ;;  %v38_v9 = vld [vmem:[%s3115_s1 + $0x48] sm:$0xff]  ;;  %v37_v10 = vld [vmem:[%s3115_s1 + $0x40] sm:$0xff]  ;;  %v3120_v45 = vlaneseq  ;;  %s27_s16 = sld [smem:[#allocation3]] }
  0x1b   :  { %v40_v11 = vld [vmem:[%s3115_s1 + $0x58] sm:$0xff]  ;;  %v39_v12 = vld [vmem:[%s3115_s1 + $0x50] sm:$0xff]  ;;  %v42_v13 = vld [vmem:[%s3115_s1 + $0x68] sm:$0xff]  ;;  %s1312_s18 = sld [smem:[#allocation3 + $0x1]] }
  0x1c   :  { %v41_v14 = vld [vmem:[%s3115_s1 + $0x60] sm:$0xff]  ;;  %v44_v15 = vld [vmem:[%s3115_s1 + $0x78] sm:$0xff]  ;;  %v43_v16 = vld [vmem:[%s3115_s1 + $0x70] sm:$0xff]  ;;  %v1639_v53 = vshrl.u32 %v3120_v45, 7 }
  0x1d   :  { %99 = vperm.xlu1 %1318, %v36_v7   ;;  %94 = vperm.xlu0 %1317, %v35_v8   ;;  %v46_v17 = vld [vmem:[%s3115_s1 + $0x88] sm:$0xff]  ;;  %v45_v18 = vld [vmem:[%s3115_s1 + $0x80] sm:$0xff]  ;;  %v48_v19 = vld [vmem:[%s3115_s1 + $0x98] sm:$0xff] }
  0x1e   :  { %v47_v20 = vld [vmem:[%s3115_s1 + $0x90] sm:$0xff]  ;;  %v50_v21 = vld [vmem:[%s3115_s1 + $0xa8] sm:$0xff]  ;;  %v49_v22 = vld [vmem:[%s3115_s1 + $0xa0] sm:$0xff]  ;;  %3187 = vst [vmem:[#allocation8_spill] sm:$0xff] %v1639_v53  ;;  %v225_v0 = vsub.s32 0, %v1639_v53  ;;  %v229_v1 = vsub.s32 1, %v1639_v53 }
  0x1f   :  { %v52_v23 = vld [vmem:[%s3115_s1 + $0xb8] sm:$0xff]  ;;  %v51_v24 = vld [vmem:[%s3115_s1 + $0xb0] sm:$0xff]  ;;  %v54_v25 = vld [vmem:[%s3115_s1 + $0xc8] sm:$0xff] }
  0x20   :  { %v53_v26 = vld [vmem:[%s3115_s1 + $0xc0] sm:$0xff]  ;;  %v56_v27 = vld [vmem:[%s3115_s1 + $0xd8] sm:$0xff]  ;;  %v55_v28 = vld [vmem:[%s3115_s1 + $0xd0] sm:$0xff] }
  0x21   :  { %109 = vperm.xlu1 %1318, %v38_v9   ;;  %104 = vperm.xlu0 %1317, %v37_v10   ;;  %v58_v29 = vld [vmem:[%s3115_s1 + $0xe8] sm:$0xff]  ;;  %v57_v30 = vld [vmem:[%s3115_s1 + $0xe0] sm:$0xff]  ;;  %v60_v31 = vld [vmem:[%s3115_s1 + $0xf8] sm:$0xff] }
  0x22   :  { %v59_v32 = vld [vmem:[%s3115_s1 + $0xf0] sm:$0xff]  ;;  %v490_v33 = vld [vmem:[%s3118_s4] sm:$0xff]  ;;  %v491_v34 = vld [vmem:[%s3118_s4 + $0x8] sm:$0xff] }
  0x23   :  { %vm506_vm0 = vnez %v490_v33  ;;  %vm507_vm1 = vnez %v491_v34  ;;  %v492_v37 = vld [vmem:[%s3118_s4 + $0x10] sm:$0xff]  ;;  %v493_v38 = vld [vmem:[%s3118_s4 + $0x18] sm:$0xff]  ;;  %v494_v61 = vld [vmem:[%s3118_s4 + $0x20] sm:$0xff] }
  0x24   :  { %v522_v35 = vsel %vm506_vm0, 16843009, %v3124_v2  ;;  %v523_v36 = vsel %vm507_vm1, 16843009, %v3124_v2  ;;  %vm508_vm2 = vnez %v492_v37  ;;  %vm509_vm3 = vnez %v493_v38  ;;  %v495_v62 = vld [vmem:[%s3118_s4 + $0x28] sm:$0xff]  ;;  %v498_v38 = vld [vmem:[%s3118_s4 + $0x40] sm:$0xff] }
  0x25   :  { %119 = vperm.xlu1 %1318, %v40_v11   ;;  %114 = vperm.xlu0 %1317, %v39_v12   ;;  %v542_v39 = vunpack.c.2.s8 %v522_v35  ;;  %v543_v40 = vunpack.c.2.s8 %v523_v36  ;;  %v538_v41 = vunpack.c.0.s8 %v522_v35  ;;  %v539_v42 = vunpack.c.0.s8 %v523_v36  ;;  %v61_v5 = vld [vmem:[%s3117_s3] sm:$0x3] }
  0x26   :  { %v544_v43 = vunpack.c.3.s8 %v522_v35  ;;  %v545_v44 = vunpack.c.3.s8 %v523_v36  ;;  %v540_v46 = vunpack.c.1.s8 %v522_v35  ;;  %v541_v47 = vunpack.c.1.s8 %v523_v36 }
  0x27   :  { %v606_v48 = vpack.c.b16 %v543_v40, %v542_v39  ;;  %v602_v49 = vpack.c.b16 %v539_v42, %v538_v41  ;;  %v524_v50 = vsel %vm508_vm2, 16843009, %v3124_v2  ;;  %v525_v51 = vsel %vm509_vm3, 16843009, %v3124_v2  ;;  %v499_v39 = vld [vmem:[%s3118_s4 + $0x48] sm:$0xff] }
  0x28   :  { %v608_v52 = vpack.c.b16 %v545_v44, %v544_v43  ;;  %v604_v54 = vpack.c.b16 %v541_v47, %v540_v46  ;;  %v548_v55 = vunpack.c.1.s8 %v524_v50  ;;  %v549_v56 = vunpack.c.1.s8 %v525_v51 }
  0x29   :  { %129 = vperm.xlu1 %1318, %v42_v13   ;;  %124 = vperm.xlu0 %1317, %v41_v14   ;;  %v607_v57 = vpack.c.b8 %v606_v48, %v606_v48  ;;  %v603_v58 = vpack.c.b8 %v602_v49, %v602_v49  ;;  %v546_v59 = vunpack.c.0.s8 %v524_v50  ;;  %v547_v60 = vunpack.c.0.s8 %v525_v51 }
  0x2a   :  { %v609_v63 = vpack.c.b8 %v608_v52, %v608_v52  ;;  %v605_v3 = vpack.c.b8 %v604_v54, %v604_v54  ;;  %v552_v4 = vunpack.c.3.s8 %v524_v50  ;;  %vm510_vm4 = vnez %v494_v61 }
  0x2b   :  { %vm511_vm5 = vnez %v495_v62  ;;  %vm668_vm6 = vnez %v607_v57  ;;  %vm666_vm7 = vnez %v603_v58  ;;  %v612_v6 = vpack.c.b16 %v549_v56, %v548_v55 }
  0x2c   :  { %v610_v7 = vpack.c.b16 %v547_v60, %v546_v59  ;;  %vm669_vm8 = vnez %v609_v63  ;;  %v553_v8 = vunpack.c.3.s8 %v525_v51  ;;  %v550_v9 = vunpack.c.2.s8 %v524_v50 }
  0x2d   :  { %139 = vperm.xlu1 %1318, %v44_v15   ;;  %134 = vperm.xlu0 %1317, %v43_v16   ;;  %v551_v10 = vunpack.c.2.s8 %v525_v51  ;;  %v1652_v11 = vstv %s27_s16  ;;  %v526_v12 = vsel %vm510_vm4, 16843009, %v3124_v2  ;;  %v527_v13 = vsel %vm511_vm5, 16843009, %v3124_v2 }
  0x2e   :  { %v1656_v14 = vrot.slane %v61_v5, %v225_v0  ;;  %v1658_v15 = vrot.slane %v61_v5, %v229_v1  ;;  %v1661_v16 = vsel %vm668_vm6, 16843009, %v3124_v2  ;;  %vm1675_vm9 = vnez %v605_v3 }
  0x2f   :  { %v1687_v35 = vsel %vm1675_vm9, 16843009, %v3124_v2  ;;  %v560_v47 = vunpack.c.3.s8 %v526_v12  ;;  %v561_v48 = vunpack.c.3.s8 %v527_v13  ;;  %v558_v49 = vunpack.c.2.s8 %v526_v12 }
  0x30   :  { %v559_v50 = vunpack.c.2.s8 %v527_v13  ;;  %vm514_vm14 = vnez %v498_v38  ;;  %vm515_vm15 = vnez %v499_v39 }
  0x31   :  { %149 = vperm.xlu1 %1318, %v46_v17   ;;  %144 = vperm.xlu0 %1317, %v45_v18   ;;  %v1664_v17 = vsel %vm666_vm7, 16843009, %v3124_v2  ;;  %v496_v18 = vld [vmem:[%s3118_s4 + $0x30] sm:$0xff]  ;;  %v1733_v62 = vsel %vm514_vm14, 16843009, %v3124_v2  ;;  %v624_v1 = vpack.c.b16 %v561_v48, %v560_v47 }
  0x32   :  { %vm512_vm10 = vnez %v496_v18  ;;  %v731_v33 = vunpack.c.1.s8 %v1664_v17  ;;  %v1736_v63 = vsel %vm515_vm15, 16843009, %v3124_v2  ;;  %v622_v3 = vpack.c.b16 %v559_v50, %v558_v49 }
  0x33   :  { %v1704_v42 = vsel %vm512_vm10, 16843009, %v3124_v2  ;;  %v570_v36 = vunpack.c.0.s8 %v1733_v62  ;;  %v571_v38 = vunpack.c.0.s8 %v1736_v63  ;;  %v576_v39 = vunpack.c.3.s8 %v1733_v62 }
  0x34   :  { %v564_v54 = vunpack.c.1.s8 %v1704_v42 }
  0x35   :  { %159 = vperm.xlu1 %1318, %v48_v19   ;;  %154 = vperm.xlu0 %1317, %v47_v20   ;;  %v497_v19 = vld [vmem:[%s3118_s4 + $0x38] sm:$0xff]  ;;  %v1673_v20 = vsel %vm669_vm8, 16843009, %v3124_v2 }
  0x36   :  { %vm513_vm11 = vnez %v497_v19 }
  0x37   :  { %v1707_v43 = vsel %vm513_vm11, 16843009, %v3124_v2 }
  0x38   :  { %v565_v55 = vunpack.c.1.s8 %v1707_v43  ;;  %v569_v52 = vunpack.c.3.s8 %v1707_v43 }
  0x39   :  { %169 = vperm.xlu1 %1318, %v50_v21   ;;  %164 = vperm.xlu0 %1317, %v49_v22   ;;  %v613_v22 = vpack.c.b8 %v612_v6, %v612_v6  ;;  %v563_v6 = vunpack.c.0.s8 %v1707_v43 }
  0x3a   :  { %v628_v5 = vpack.c.b16 %v565_v55, %v564_v54 }
  0x3b   :  { %vm1689_vm12 = vnez %v613_v22 }
  0x3c   :  { %v1717_v57 = vsel %vm1689_vm12, 16843009, %v3124_v2 }
  0x3d   :  { %179 = vperm.xlu1 %1318, %v52_v23   ;;  %174 = vperm.xlu0 %1317, %v51_v24   ;;  %v611_v23 = vpack.c.b8 %v610_v7, %v610_v7  ;;  %v616_v24 = vpack.c.b16 %v553_v8, %v552_v4  ;;  %v562_v4 = vunpack.c.0.s8 %v1704_v42  ;;  %v566_v7 = vunpack.c.2.s8 %v1704_v42 }
  0x3e   :  { %v567_v8 = vunpack.c.2.s8 %v1707_v43 }
  0x3f   :  { %vm1693_vm13 = vnez %v611_v23  ;;  %v617_v40 = vpack.c.b8 %v616_v24, %v616_v24  ;;  %v503_v23 = vld [vmem:[%s3118_s4 + $0x68] sm:$0xff] }
  0x40   :  { %v1722_v58 = vsel %vm1693_vm13, 16843009, %v3124_v2  ;;  %vm519_vm13 = vnez %v503_v23  ;;  %v504_v23 = vld [vmem:[%s3118_s4 + $0x70] sm:$0xff] }
  0x41   :  { %189 = vperm.xlu1 %1318, %v54_v25   ;;  %184 = vperm.xlu0 %1317, %v53_v26   ;;  %v614_v25 = vpack.c.b16 %v551_v10, %v550_v9  ;;  %v556_v26 = vunpack.c.1.s8 %v526_v12  ;;  %vm1724_vm0 = vnez %v617_v40  ;;  %v577_v40 = vunpack.c.3.s8 %v1736_v63 }
  0x42   :  { %v1751_v21 = vsel %vm1724_vm0, 16843009, %v3124_v2  ;;  %vm520_vm0 = vnez %v504_v23 }
  0x43   :  { %v615_v41 = vpack.c.b8 %v614_v25, %v614_v25  ;;  %v625_v25 = vpack.c.b8 %v624_v1, %v624_v1  ;;  %v1876_v48 = vsel %vm520_vm0, 16843009, %v3124_v2 }
  0x44   :  { %v596_v9 = vunpack.c.1.s8 %v1876_v48  ;;  %v594_v51 = vunpack.c.0.s8 %v1876_v48 }
  0x45   :  { %199 = vperm.xlu1 %1318, %v56_v27   ;;  %194 = vperm.xlu0 %1317, %v55_v28   ;;  %v557_v27 = vunpack.c.1.s8 %v527_v13  ;;  %v554_v28 = vunpack.c.0.s8 %v526_v12  ;;  %vm1728_vm1 = vnez %v615_v41  ;;  %v572_v12 = vunpack.c.1.s8 %v1733_v62  ;;  %v500_v41 = vld [vmem:[%s3118_s4 + $0x50] sm:$0xff] }
  0x46   :  { %v1756_v22 = vsel %vm1728_vm1, 16843009, %v3124_v2  ;;  %vm677_vm4 = vnez %v625_v25  ;;  %vm516_vm6 = vnez %v500_v41  ;;  %v505_v25 = vld [vmem:[%s3118_s4 + $0x78] sm:$0xff] }
  0x47   :  { %v620_v44 = vpack.c.b16 %v557_v27, %v556_v26  ;;  %v623_v26 = vpack.c.b8 %v622_v3, %v622_v3  ;;  %v629_v27 = vpack.c.b8 %v628_v5, %v628_v5  ;;  %vm521_vm1 = vnez %v505_v25 }
  0x48   :  { %v1879_v1 = vsel %vm521_vm1, 16843009, %v3124_v2 }
  0x49   :  { %209 = vperm.xlu1 %1318, %v58_v29   ;;  %204 = vperm.xlu0 %1317, %v57_v30   ;;  %v555_v29 = vunpack.c.0.s8 %v527_v13  ;;  %v734_v30 = vunpack.c.0.s8 %v1661_v16  ;;  %v621_v61 = vpack.c.b8 %v620_v44, %v620_v44  ;;  %v573_v13 = vunpack.c.1.s8 %v1736_v63  ;;  %v501_v44 = vld [vmem:[%s3118_s4 + $0x58] sm:$0xff] }
  0x4a   :  { %vm676_vm5 = vnez %v623_v26  ;;  %vm517_vm7 = vnez %v501_v44  ;;  %vm679_vm8 = vnez %v629_v27  ;;  %v574_v27 = vunpack.c.2.s8 %v1733_v62 }
  0x4b   :  { %v618_v46 = vpack.c.b16 %v555_v29, %v554_v28  ;;  %vm1758_vm2 = vnez %v621_v61  ;;  %v626_v28 = vpack.c.b16 %v563_v6, %v562_v4  ;;  %v630_v29 = vpack.c.b16 %v567_v8, %v566_v7 }
  0x4c   :  { %v636_v37 = vpack.c.b16 %v573_v13, %v572_v12  ;;  %v1783_v50 = vsel %vm1758_vm2, 16843009, %v3124_v2  ;;  %v634_v61 = vpack.c.b16 %v571_v38, %v570_v36  ;;  %v1793_v4 = vsel %vm677_vm4, 16843009, %v3124_v2  ;;  %v502_v13 = vld [vmem:[%s3118_s4 + $0x60] sm:$0xff] }
  0x4d   :  { %219 = vperm.xlu1 %1318, %v60_v31   ;;  %214 = vperm.xlu0 %1317, %v59_v32   ;;  %v735_v31 = vunpack.c.1.s8 %v1661_v16  ;;  %v730_v32 = vunpack.c.0.s8 %v1664_v17  ;;  %v619_v0 = vpack.c.b8 %v618_v46, %v618_v46  ;;  %v627_v55 = vpack.c.b8 %v626_v28, %v626_v28  ;;  %3202 = vst [vmem:[#allocation9_spill] sm:$0xff] %v1793_v4 }
  0x4e   :  { %v631_v59 = vpack.c.b8 %v630_v29, %v630_v29  ;;  %v637_v60 = vpack.c.b8 %v636_v37, %v636_v37  ;;  %v1796_v5 = vsel %vm676_vm5, 16843009, %v3124_v2  ;;  %v532_v8 = vsel %vm516_vm6, 16843009, %v3124_v2 }
  0x4f   :  { %vm1762_vm3 = vnez %v619_v0  ;;  %v640_v0 = vpack.c.b16 %v577_v40, %v576_v39  ;;  %v533_v12 = vsel %vm517_vm7, 16843009, %v3124_v2  ;;  %v1809_v24 = vsel %vm679_vm8, 16843009, %v3124_v2 }
  0x50   :  { %v1788_v54 = vsel %vm1762_vm3, 16843009, %v3124_v2  ;;  %3203 = vst [vmem:[#allocation10_spill] sm:$0xff] %v1809_v24  ;;  %vm1811_vm9 = vnez %v627_v55  ;;  %vm1815_vm10 = vnez %v631_v59  ;;  %vm683_vm11 = vnez %v637_v60 }
  0x51   :  { %v635_v28 = vpack.c.b8 %v634_v61, %v634_v61  ;;  %v641_v29 = vpack.c.b8 %v640_v0, %v640_v0  ;;  %v575_v36 = vunpack.c.2.s8 %v1736_v63  ;;  %v580_v37 = vunpack.c.1.s8 %v532_v8 }
  0x52   :  { %v581_v38 = vunpack.c.1.s8 %v533_v12  ;;  %vm518_vm12 = vnez %v502_v13  ;;  %v1829_v62 = vsel %vm1811_vm9, 16843009, %v3124_v2  ;;  %v1834_v63 = vsel %vm1815_vm10, 16843009, %v3124_v2 }
  0x53   :  { %v1837_v59 = vsel %vm683_vm11, 16843009, %v3124_v2  ;;  %vm1839_vm14 = vnez %v635_v28  ;;  %v638_v61 = vpack.c.b16 %v575_v36, %v574_v27  ;;  %v534_v0 = vsel %vm518_vm12, 16843009, %v3124_v2 }
  0x54   :  { %v535_v13 = vsel %vm519_vm13, 16843009, %v3124_v2  ;;  %vm1851_vm15 = vnez %v641_v29  ;;  %v644_v28 = vpack.c.b16 %v581_v38, %v580_v37  ;;  %v578_v45 = vunpack.c.0.s8 %v532_v8 }
  0x55   :  { %v579_v40 = vunpack.c.0.s8 %v533_v12  ;;  %v584_v27 = vunpack.c.3.s8 %v532_v8  ;;  %v585_v36 = vunpack.c.3.s8 %v533_v12  ;;  %v582_v41 = vunpack.c.2.s8 %v532_v8 }
  0x56   :  { %v583_v55 = vunpack.c.2.s8 %v533_v12  ;;  %v588_v6 = vunpack.c.1.s8 %v534_v0  ;;  %v589_v39 = vunpack.c.1.s8 %v535_v13  ;;  %v1868_v12 = vsel %vm1839_vm14, 16843009, %v3124_v2 }
  0x57   :  { %v639_v23 = vpack.c.b8 %v638_v61, %v638_v61  ;;  %v1873_v25 = vsel %vm1851_vm15, 16843009, %v3124_v2  ;;  %v645_v3 = vpack.c.b8 %v644_v28, %v644_v28  ;;  %v642_v46 = vpack.c.b16 %v579_v40, %v578_v45 }
  0x58   :  { %v648_v8 = vpack.c.b16 %v585_v36, %v584_v27  ;;  %v646_v38 = vpack.c.b16 %v583_v55, %v582_v41  ;;  %v652_v29 = vpack.c.b16 %v589_v39, %v588_v6  ;;  %v586_v60 = vunpack.c.0.s8 %v534_v0 }
  0x59   :  { %v587_v18 = vunpack.c.0.s8 %v535_v13  ;;  %v592_v44 = vunpack.c.3.s8 %v534_v0  ;;  %v593_v61 = vunpack.c.3.s8 %v535_v13  ;;  %v590_v7 = vunpack.c.2.s8 %v534_v0 }
  0x5a   :  { %v591_v28 = vunpack.c.2.s8 %v535_v13  ;;  %v597_v49 = vunpack.c.1.s8 %v1879_v1  ;;  %vm1890_vm2 = vnez %v639_v23  ;;  %vm1895_vm3 = vnez %v645_v3 }
  0x5b   :  { %v643_v55 = vpack.c.b8 %v642_v46, %v642_v46  ;;  %v649_v0 = vpack.c.b8 %v648_v8, %v648_v8  ;;  %v647_v13 = vpack.c.b8 %v646_v38, %v646_v38  ;;  %v653_v27 = vpack.c.b8 %v652_v29, %v652_v29 }
  0x5c   :  { %v650_v36 = vpack.c.b16 %v587_v18, %v586_v60  ;;  %v656_v56 = vpack.c.b16 %v593_v61, %v592_v44  ;;  %v654_v23 = vpack.c.b16 %v591_v28, %v590_v7  ;;  %v660_v6 = vpack.c.b16 %v597_v49, %v596_v9 }
  0x5d   :  { %v595_v40 = vunpack.c.0.s8 %v1879_v1  ;;  %v568_v3 = vunpack.c.3.s8 %v1704_v42  ;;  %v600_v46 = vunpack.c.3.s8 %v1876_v48  ;;  %v601_v29 = vunpack.c.3.s8 %v1879_v1 }
  0x5e   :  { %v1913_v44 = vsel %vm1890_vm2, 16843009, %v3124_v2  ;;  %v1918_v9 = vsel %vm1895_vm3, 16843009, %v3124_v2  ;;  %vm1920_vm4 = vnez %v643_v55  ;;  %vm1924_vm5 = vnez %v649_v0 }
  0x5f   :  { %vm1928_vm6 = vnez %v647_v13  ;;  %v651_v7 = vpack.c.b8 %v650_v36, %v650_v36  ;;  %v657_v38 = vpack.c.b8 %v656_v56, %v656_v56  ;;  %vm691_vm7 = vnez %v653_v27 }
  0x60   :  { %v655_v60 = vpack.c.b8 %v654_v23, %v654_v23  ;;  %v661_v61 = vpack.c.b8 %v660_v6, %v660_v6  ;;  %v658_v28 = vpack.c.b16 %v595_v40, %v594_v51  ;;  %v632_v39 = vpack.c.b16 %v569_v52, %v568_v3 }
  0x61   :  { %v664_v41 = vpack.c.b16 %v601_v29, %v600_v46  ;;  %v598_v55 = vunpack.c.2.s8 %v1876_v48  ;;  %v599_v0 = vunpack.c.2.s8 %v1879_v1  ;;  %v1943_v56 = vsel %vm1920_vm4, 16843009, %v3124_v2 }
  0x62   :  { %3222 = vst [vmem:[#allocation11_spill] sm:$0xff] %v1943_v56  ;;  %v1948_v51 = vsel %vm1924_vm5, 16843009, %v3124_v2  ;;  %v1953_v52 = vsel %vm1928_vm6, 16843009, %v3124_v2  ;;  %vm1958_vm8 = vnez %v651_v7  ;;  %vm1962_vm9 = vnez %v657_v38 }
  0x63   :  { %3223 = vst [vmem:[#allocation12_spill] sm:$0xff] %v1948_v51  ;;  %3224 = vst [vmem:[#allocation13_spill] sm:$0xff] %v1953_v52  ;;  %v1956_v48 = vsel %vm691_vm7, 16843009, %v3124_v2  ;;  %vm1968_vm10 = vnez %v655_v60  ;;  %vm1972_vm11 = vnez %v661_v61  ;;  %v659_v23 = vpack.c.b8 %v658_v28, %v658_v28 }
  0x64   :  { %3225 = vst [vmem:[#allocation14_spill] sm:$0xff] %v1956_v48  ;;  %v633_v29 = vpack.c.b8 %v632_v39, %v632_v39  ;;  %v665_v42 = vpack.c.b8 %v664_v41, %v664_v41  ;;  %v662_v43 = vpack.c.b16 %v599_v0, %v598_v55  ;;  %v1991_v39 = vsel %vm1958_vm8, 16843009, %v3124_v2 }
  0x65   :  { %3234 = vst [vmem:[#allocation15_spill] sm:$0xff] %v1991_v39  ;;  %v2003_v55 = vsel %vm1968_vm10, 16843009, %v3124_v2  ;;  %v2008_v0 = vsel %vm1972_vm11, 16843009, %v3124_v2  ;;  %vm2010_vm12 = vnez %v659_v23  ;;  %vm2016_vm13 = vcmp.ne.s32.totalorder %v734_v30, 0 }
  0x66   :  { %3236 = vst [vmem:[#allocation17_spill] sm:$0xff] %v2003_v55  ;;  %3237 = vst [vmem:[#allocation18_spill] sm:$0xff] %v2008_v0  ;;  %vm2020_vm14 = vnez %v633_v29  ;;  %vm2024_vm15 = vnez %v665_v42  ;;  %v663_v36 = vpack.c.b8 %v662_v43, %v662_v43  ;;  %vm2030_vm0 = vcmp.ne.s32.totalorder %v730_v32, 0 }
  0x67   :  { %vm2039_vm1 = vcmp.ne.s32.totalorder %v735_v31, 0  ;;  %vm2045_vm2 = vcmp.ne.s32.totalorder %v731_v33, 0  ;;  %v2058_v16 = vsel %vm2010_vm12, 16843009, %v3124_v2  ;;  %v2064_v33 = vsel %vm2020_vm14, 16843009, %v3124_v2 }
  0x68   :  { %3252 = vst [vmem:[#allocation19_spill] sm:$0xff] %v2058_v16  ;;  %3253 = vst [vmem:[#allocation20_spill] sm:$0xff] %v2064_v33  ;;  %v2069_v53 = vsel %vm2024_vm15, 16843009, %v3124_v2  ;;  %vm696_vm3 = vnez %v663_v36  ;;  %v3255_v61 = vunpack.c.0.s8 %v1673_v20  ;;  %v3258_v36 = vunpack.c.0.s8 %v1687_v35 }
  0x69   :  { %3254 = vst [vmem:[#allocation21_spill] sm:$0xff] %v2069_v53  ;;  %v3266_v33 = vunpack.c.1.s8 %v1722_v58  ;;  %v3308_v39 = vunpack.c.1.s8 %v1751_v21 }
  0x6a   :  { %vm2082_vm4 = vcmp.ne.s32.totalorder %v3255_v61, 0  ;;  %vm2098_vm5 = vcmp.ne.s32.totalorder %v3258_v36, 0 }
  0x6b   :  { %vm2128_vm7 = vcmp.ne.s32.totalorder %v3266_v33, 0 }
  0x8c   :  { %v1859_v47 = vpop.permute.xlu1 %74  ;;  %v1861_v37 = vpop.permute.xlu0 %64 }
  0x8d   :  { %v237_v40 = vadd.f32 %v1656_v14, %v1859_v47  ;;  %v233_v3 = vadd.f32 %v1656_v14, %v1861_v37  ;;  %v238_v49 = vadd.f32 %v1658_v15, %v1859_v47  ;;  %v234_v7 = vadd.f32 %v1658_v15, %v1861_v37 }
  0x8e   :  { %v1996_v47 = vsel %vm1962_vm9, 16843009, %v3124_v2 }
  0x8f   :  { %3235 = vst [vmem:[#allocation16_spill] sm:$0xff] %v1996_v47  ;;  %v301_v41 = vmul.f32 0.2, %v237_v40  ;;  %v297_v28 = vmul.f32 0.2, %v233_v3 }
  0x90   :  { %v1881_v10 = vpop.permute.xlu1 %79  ;;  %v1883_v26 = vpop.permute.xlu0 %69  ;;  %v302_v23 = vmul.f32 0.2, %v238_v49  ;;  %v298_v30 = vmul.f32 0.2, %v234_v7 }
  0x91   :  { %v239_v38 = vadd.f32 %v1656_v14, %v1881_v10  ;;  %v235_v32 = vadd.f32 %v1656_v14, %v1883_v26  ;;  %v365_v31 = vmax.f32 %v237_v40, %v301_v41  ;;  %v361_v13 = vmax.f32 %v233_v3, %v297_v28 }
  0x92   :  { %v240_v29 = vadd.f32 %v1658_v15, %v1881_v10  ;;  %v366_v40 = vmax.f32 %v238_v49, %v302_v23  ;;  %v362_v41 = vmax.f32 %v234_v7, %v298_v30  ;;  %v2088_v10 = vadd.f32 %v1658_v15, %v1883_v26 }
  0x93   :  { %v303_v17 = vmul.f32 0.2, %v239_v38  ;;  %v299_v3 = vmul.f32 0.2, %v235_v32  ;;  %v430_v28 = vmul.f32 %v1652_v11, %v365_v31  ;;  %v3261_v26 = vmov 0  }
  0x94   :  { %v1899_v19 = vpop.permute.xlu1 %89  ;;  %v1901_v45 = vpop.permute.xlu0 %84  ;;  %v2105_v61 = vsel %vm696_vm3, 16843009, %v3261_v26  ;;  %v426_v16 = vmul.f32 %v1652_v11, %v361_v13  ;;  %v304_v55 = vmul.f32 0.2, %v240_v29  ;;  %v431_v53 = vmul.f32 %v1652_v11, %v366_v40 }
  0x95   :  { %v2075_v1 = vadd.f32 %v1658_v15, %v1901_v45  ;;  %v243_v30 = vadd.f32 %v1656_v14, %v1899_v19  ;;  %3262 = vst [vmem:[#allocation22_spill] sm:$0xff] %v2105_v61  ;;  %v427_v47 = vmul.f32 %v1652_v11, %v362_v41  ;;  %v3263_v26 = vunpack.c.1.s8 %v1673_v20 }
  0x96   :  { %v367_v13 = vmax.f32 %v239_v38, %v303_v17  ;;  %v244_v0 = vadd.f32 %v1658_v15, %v1899_v19  ;;  %v300_v40 = vmul.f32 0.2, %v2088_v10  ;;  %v363_v52 = vmax.f32 %v235_v32, %v299_v3 }
  0x97   :  { %v306_v7 = vmul.f32 0.2, %v2075_v1  ;;  %vm2120_vm6 = vcmp.ne.s32.totalorder %v3263_v26, 0  ;;  %v2140_v38 = vsel %vm2016_vm13, %v430_v28, -1e+30  ;;  %v3270_v19 = vunpack.c.1.s8 %v1687_v35 }
  0x98   :  { %v1932_v8 = vpop.permute.xlu1 %99  ;;  %v1936_v18 = vpop.permute.xlu0 %94  ;;  %3269 = vst [vmem:[#allocation23_spill] sm:$0xff] %v2140_v38  ;;  %v307_v33 = vmul.f32 0.2, %v243_v30  ;;  %v241_v32 = vadd.f32 %v1656_v14, %v1901_v45  ;;  %v3273_v3 = vunpack.c.1.s8 %v1756_v22  ;;  %v2161_v35 = vsel %vm2030_vm0, %v426_v16, -1e+30 }
  0x99   :  { %v2092_v49 = vadd.f32 %v1658_v15, %v1936_v18  ;;  %vm2144_vm8 = vcmp.ne.s32.totalorder %v3270_v19, 0  ;;  %3276 = vst [vmem:[#allocation24_spill] sm:$0xff] %v2161_v35  ;;  %v368_v28 = vmax.f32 %v240_v29, %v304_v55  ;;  %v3277_v19 = vunpack.c.0.s8 %v1717_v57 }
  0x9a   :  { %vm2152_vm9 = vcmp.ne.s32.totalorder %v3273_v3, 0  ;;  %v370_v45 = vmax.f32 %v2075_v1, %v306_v7  ;;  %v2173_v4 = vsel %vm2039_vm1, %v431_v53, -1e+30  ;;  %v2177_v60 = vsel %vm2045_vm2, %v427_v47, -1e+30 }
  0x9b   :  { %v310_v41 = vmul.f32 0.2, %v2092_v49  ;;  %vm2165_vm10 = vcmp.ne.s32.totalorder %v3277_v19, 0  ;;  %3280 = vst [vmem:[#allocation25_spill] sm:$0xff] %v2173_v4  ;;  %3281 = vst [vmem:[#allocation26_spill] sm:$0xff] %v2177_v60  ;;  %v432_v55 = vmul.f32 %v1652_v11, %v367_v13  ;;  %v3282_v16 = vunpack.c.1.s8 %v1788_v54 }
  0x9c   :  { %v1978_v46 = vpop.permute.xlu1 %109  ;;  %v1998_v37 = vpop.permute.xlu0 %104  ;;  %v308_v29 = vmul.f32 0.2, %v244_v0  ;;  %v364_v1 = vmax.f32 %v2088_v10, %v300_v40  ;;  %v428_v7 = vmul.f32 %v1652_v11, %v363_v52  ;;  %v3285_v53 = vunpack.c.1.s8 %v1717_v57 }
  0x9d   :  { %v2112_v31 = vadd.f32 %v1658_v15, %v1998_v37  ;;  %vm2182_vm11 = vcmp.ne.s32.totalorder %v3282_v16, 0  ;;  %v374_v47 = vmax.f32 %v2092_v49, %v310_v41  ;;  %v371_v6 = vmax.f32 %v243_v30, %v307_v33 }
  0x9e   :  { %vm2190_vm12 = vcmp.ne.s32.totalorder %v3285_v53, 0  ;;  %v305_v61 = vmul.f32 0.2, %v241_v32  ;;  %v247_v52 = vadd.f32 %v1656_v14, %v1932_v8  ;;  %v3289_v57 = vunpack.c.1.s8 %v1796_v5 }
  0x9f   :  { %v314_v3 = vmul.f32 0.2, %v2112_v31  ;;  %v433_v49 = vmul.f32 %v1652_v11, %v368_v28  ;;  %v3292_v40 = vunpack.c.0.s8 %v1722_v58  ;;  %v435_v30 = vmul.f32 %v1652_v11, %v370_v45 }
  0xa0   :  { %v2051_v34 = vpop.permute.xlu1 %119  ;;  %v2077_v27 = vpop.permute.xlu0 %114  ;;  %vm2204_vm13 = vcmp.ne.s32.totalorder %v3289_v57, 0  ;;  %v248_v33 = vadd.f32 %v1658_v15, %v1932_v8  ;;  %v959_v57 = vmax.f32 %v2177_v60, %v2173_v4  ;;  %v2223_v16 = vsel %vm2082_vm4, %v432_v55, -1e+30 }
  0xa1   :  { %v2136_v20 = vadd.f32 %v1658_v15, %v2077_v27  ;;  %vm2211_vm14 = vcmp.ne.s32.totalorder %v3292_v40, 0  ;;  %v378_v53 = vmax.f32 %v2112_v31, %v314_v3  ;;  %3295 = vst [vmem:[#allocation28_spill] sm:$0xff] %v2223_v16  ;;  %v372_v28 = vmax.f32 %v244_v0, %v308_v29 }
  0xa2   :  { %v3296_v58 = vunpack.c.1.s8 %v1829_v62  ;;  %v429_v31 = vmul.f32 %v1652_v11, %v364_v1  ;;  %v2238_v3 = vsel %vm2098_vm5, %v428_v7, -1e+30  ;;  %v439_v2 = vmul.f32 %v1652_v11, %v374_v47 }
  0xa3   :  { %v318_v43 = vmul.f32 0.2, %v2136_v20  ;;  %3299 = vst [vmem:[#allocation29_spill] sm:$0xff] %v2238_v3  ;;  %v436_v55 = vmul.f32 %v1652_v11, %v371_v6  ;;  %v369_v29 = vmax.f32 %v241_v32, %v305_v61  ;;  %v3300_v4 = vunpack.c.1.s8 %v1834_v63 }
  0xa4   :  { %v2114_v36 = vpop.permute.xlu1 %129  ;;  %v2156_v24 = vpop.permute.xlu0 %124  ;;  %vm2227_vm15 = vcmp.ne.s32.totalorder %v3296_v58, 0  ;;  %v311_v58 = vmul.f32 0.2, %v247_v52  ;;  %v2251_v23 = vsel %vm2120_vm6, %v433_v49, -1e+30  ;;  %v437_v7 = vmul.f32 %v1652_v11, %v372_v28 }
  0xa5   :  { %v258_v45 = vadd.f32 %v1658_v15, %v2156_v24  ;;  %v382_v0 = vmax.f32 %v2136_v20, %v318_v43  ;;  %vm2245_vm0 = vcmp.ne.s32.totalorder %v3300_v4, 0  ;;  %3303 = vst [vmem:[#allocation30_spill] sm:$0xff] %v2251_v23  ;;  %v2255_v1 = vsel %vm2128_vm7, %v435_v30, -1e+30 }
  0xa6   :  { %3304 = vst [vmem:[#allocation31_spill] sm:$0xff] %v2255_v1  ;;  %v3305_v20 = vunpack.c.0.s8 %v1751_v21  ;;  %v312_v32 = vmul.f32 0.2, %v248_v33  ;;  %v443_v4 = vmul.f32 %v1652_v11, %v378_v53  ;;  %vm2269_vm2 = vcmp.ne.s32.totalorder %v3308_v39, 0 }
  0xa7   :  { %v322_v60 = vmul.f32 0.2, %v258_v45  ;;  %v2275_v48 = vadd.f32 %v1656_v14, %v1936_v18  ;;  %v2281_v30 = vsel %vm2144_vm8, %v429_v31, -1e+30  ;;  %v923_v53 = vmax.f32 %v2238_v3, %v2223_v16 }
  0xa8   :  { %v2196_v13 = vpop.permute.xlu1 %139  ;;  %v2233_v8 = vpop.permute.xlu0 %134  ;;  %vm2259_vm1 = vcmp.ne.s32.totalorder %v3305_v20, 0  ;;  %3311 = vst [vmem:[#allocation32_spill] sm:$0xff] %v2281_v30  ;;  %v2287_v21 = vsel %vm2152_vm9, %v439_v2, -1e+30  ;;  %v447_v28 = vmul.f32 %v1652_v11, %v382_v0  ;;  %v2292_v18 = vsel %vm2165_vm10, %v436_v55, -1e+30 }
  0xa9   :  { %3288 = vst [vmem:[#allocation27_spill] sm:$0xff] %v2196_v13  ;;  %v386_v43 = vmax.f32 %v258_v45, %v322_v60  ;;  %v262_v49 = vadd.f32 %v1658_v15, %v2233_v8  ;;  %3312 = vst [vmem:[#allocation33_spill] sm:$0xff] %v2287_v21  ;;  %v434_v60 = vmul.f32 %v1652_v11, %v369_v29  ;;  %v3314_v31 = vunpack.c.1.s8 %v1837_v59 }
  0xaa   :  { %3313 = vst [vmem:[#allocation34_spill] sm:$0xff] %v2292_v18  ;;  %v961_v45 = vmax.f32 %v959_v57, %v2255_v1  ;;  %v375_v17 = vmax.f32 %v247_v52, %v311_v58  ;;  %v376_v2 = vmax.f32 %v248_v33, %v312_v32  ;;  %v2306_v0 = vsel %vm2182_vm11, %v443_v4, -1e+30 }
  0xab   :  { %vm2298_vm3 = vcmp.ne.s32.totalorder %v3314_v31, 0  ;;  %3317 = vst [vmem:[#allocation35_spill] sm:$0xff] %v2306_v0  ;;  %v451_v51 = vmul.f32 %v1652_v11, %v386_v43  ;;  %v326_v55 = vmul.f32 0.2, %v262_v49  ;;  %v960_v57 = vmax.f32 %v2281_v30, %v2251_v23 }
  0xac   :  { %v2264_v6 = vpop.permute.xlu1 %149  ;;  %v2302_v26 = vpop.permute.xlu0 %144  ;;  %v2313_v52 = vsel %vm2190_vm12, %v437_v7, -1e+30  ;;  %v309_v29 = vmul.f32 0.2, %v2275_v48  ;;  %v963_v58 = vmax.f32 %v961_v45, %v2287_v21  ;;  %v3319_v33 = vunpack.c.1.s8 %v1868_v12 }
  0xad   :  { %3318 = vst [vmem:[#allocation36_spill] sm:$0xff] %v2313_v52  ;;  %v2324_v32 = vmax.f32 %v923_v53, %v2292_v18  ;;  %v2328_v4 = vsel %vm2204_vm13, %v447_v28, -1e+30  ;;  %v390_v42 = vmax.f32 %v262_v49, %v326_v55  ;;  %v268_v7 = vadd.f32 %v1658_v15, %v2264_v6 }
  0xae   :  { %vm2319_vm4 = vcmp.ne.s32.totalorder %v3319_v33, 0  ;;  %3322 = vst [vmem:[#allocation37_spill] sm:$0xff] %v2328_v4  ;;  %v2336_v43 = vsel %vm2211_vm14, %v434_v60, -1e+30  ;;  %v440_v45 = vmul.f32 %v1652_v11, %v375_v17  ;;  %v965_v31 = vmax.f32 %v963_v58, %v2306_v0  ;;  %v3364_v0 = vld [vmem:[#allocation10_spill] sm:$0xff] }
  0xaf   :  { %3323 = vst [vmem:[#allocation38_spill] sm:$0xff] %v2336_v43  ;;  %v266_v53 = vadd.f32 %v1658_v15, %v2302_v26  ;;  %v3324_v10 = vunpack.c.1.s8 %v1873_v25  ;;  %v441_v28 = vmul.f32 %v1652_v11, %v376_v2  ;;  %v3327_v55 = vunpack.c.0.s8 %v1756_v22 }
  0xb0   :  { %v2332_v39 = vpop.permute.xlu1 %159  ;;  %v2357_v60 = vsel %vm2227_vm15, %v451_v51, -1e+30  ;;  %v455_v17 = vmul.f32 %v1652_v11, %v390_v42  ;;  %v332_v58 = vmul.f32 0.2, %v268_v7  ;;  %v2361_v33 = vmax.f32 %v960_v57, %v2313_v52 }
  0xb1   :  { %vm2344_vm5 = vcmp.ne.s32.totalorder %v3324_v10, 0  ;;  %vm2351_vm6 = vcmp.ne.s32.totalorder %v3327_v55, 0  ;;  %3330 = vst [vmem:[#allocation39_spill] sm:$0xff] %v2357_v60  ;;  %v251_v10 = vadd.f32 %v1656_v14, %v1978_v46  ;;  %v967_v2 = vmax.f32 %v965_v31, %v2328_v4  ;;  %v2366_v55 = vpop.permute.xlu0 %154 }
  0xb2   :  { %v330_v22 = vmul.f32 0.2, %v266_v53  ;;  %v3331_v40 = vmax.f32 %v2161_v35, %v2140_v38  ;;  %v2376_v42 = vsel %vm2245_vm0, %v455_v17, -1e+30  ;;  %v396_v57 = vmax.f32 %v268_v7, %v332_v58  ;;  %v3399_v35 = vld [vmem:[#allocation17_spill] sm:$0xff] }
  0xb3   :  { %3332 = vst [vmem:[#allocation40_spill] sm:$0xff] %v2376_v42  ;;  %v272_v3 = vadd.f32 %v1658_v15, %v2332_v39  ;;  %v2382_v31 = vsel %vm2259_vm1, %v440_v45, -1e+30  ;;  %v373_v30 = vmax.f32 %v2275_v48, %v309_v29  ;;  %v969_v16 = vmax.f32 %v967_v2, %v2357_v60 }
  0xb4   :  { %v2372_v51 = vmax.f32 %v3331_v40, %v2336_v43  ;;  %3333 = vst [vmem:[#allocation41_spill] sm:$0xff] %v2382_v31  ;;  %v394_v23 = vmax.f32 %v266_v53, %v330_v22  ;;  %v3334_v40 = vunpack.c.1.s8 %v1913_v44  ;;  %v2394_v13 = vsel %vm2269_vm2, %v441_v28, -1e+30  ;;  %v2399_v48 = vpop.permute.xlu1 %169 }
  0xb5   :  { %v252_v61 = vadd.f32 %v1658_v15, %v1978_v46  ;;  %v461_v7 = vmul.f32 %v1652_v11, %v396_v57  ;;  %v336_v45 = vmul.f32 0.2, %v272_v3  ;;  %v315_v29 = vmul.f32 0.2, %v251_v10  ;;  %v2431_v20 = vpop.permute.xlu0 %164 }
  0xb6   :  { %vm2388_vm7 = vcmp.ne.s32.totalorder %v3334_v40, 0  ;;  %v971_v53 = vmax.f32 %v969_v16, %v2376_v42  ;;  %v459_v17 = vmul.f32 %v1652_v11, %v394_v23  ;;  %v270_v58 = vadd.f32 %v1658_v15, %v2366_v55 }
  0xb7   :  { %v3337_v28 = vunpack.c.0.s8 %v1783_v50  ;;  %v255_v2 = vadd.f32 %v1656_v14, %v2051_v34  ;;  %v2417_v16 = vsel %vm2298_vm3, %v461_v7, -1e+30  ;;  %v400_v23 = vmax.f32 %v272_v3, %v336_v45 }
  0xb8   :  { %3340 = vst [vmem:[#allocation42_spill] sm:$0xff] %v2417_v16  ;;  %v3341_v22 = vunpack.c.1.s8 %v1918_v9  ;;  %v249_v47 = vadd.f32 %v1656_v14, %v1998_v37  ;;  %v973_v38 = vmax.f32 %v971_v53, %v2417_v16  ;;  %v316_v7 = vmul.f32 0.2, %v252_v61  ;;  %v2461_v16 = vpop.permute.xlu1 %179 }
  0xb9   :  { %vm2409_vm8 = vcmp.ne.s32.totalorder %v3337_v28, 0  ;;  %v438_v28 = vmul.f32 %v1652_v11, %v373_v30  ;;  %v2435_v3 = vsel %vm2319_vm4, %v459_v17, -1e+30  ;;  %v465_v45 = vmul.f32 %v1652_v11, %v400_v23 }
  0xba   :  { %vm2421_vm9 = vcmp.ne.s32.totalorder %v3341_v22, 0  ;;  %3344 = vst [vmem:[#allocation43_spill] sm:$0xff] %v2435_v3  ;;  %v334_v22 = vmul.f32 0.2, %v270_v58  ;;  %v3345_v43 = vunpack.c.1.s8 %v1783_v50  ;;  %v379_v30 = vmax.f32 %v251_v10, %v315_v29 }
  0xbb   :  { %v259_v37 = vadd.f32 %v1656_v14, %v2114_v36  ;;  %v975_v53 = vmax.f32 %v973_v38, %v2435_v3  ;;  %v276_v19 = vadd.f32 %v1658_v15, %v2399_v48  ;;  %v3348_v17 = vunpack.c.1.s8 %v1943_v56 }
  0xbc   :  { %vm2440_vm10 = vcmp.ne.s32.totalorder %v3345_v43, 0  ;;  %v319_v50 = vmul.f32 0.2, %v255_v2  ;;  %v253_v43 = vadd.f32 %v1656_v14, %v2077_v27  ;;  %v2459_v10 = vsel %vm2344_vm5, %v465_v45, -1e+30 }
  0xbd   :  { %vm2451_vm11 = vcmp.ne.s32.totalorder %v3348_v17, 0  ;;  %3351 = vst [vmem:[#allocation44_spill] sm:$0xff] %v2459_v10  ;;  %v398_v29 = vmax.f32 %v270_v58, %v334_v22  ;;  %v2465_v38 = vsel %vm2351_vm6, %v438_v28, -1e+30  ;;  %v313_v3 = vmul.f32 0.2, %v249_v47 }
  0xbe   :  { %3352 = vst [vmem:[#allocation45_spill] sm:$0xff] %v2465_v38  ;;  %v3353_v17 = vld [vmem:[#allocation9_spill] sm:$0xff]  ;;  %v977_v27 = vmax.f32 %v975_v53, %v2459_v10  ;;  %v340_v52 = vmul.f32 0.2, %v276_v19  ;;  %v380_v49 = vmax.f32 %v252_v61, %v316_v7  ;;  %v3357_v45 = vunpack.c.0.s8 %v1788_v54  ;;  %v3360_v22 = vld [vmem:[#allocation12_spill] sm:$0xff] }
  0xbf   :  { %v3354_v1 = vunpack.c.0.s8 %v3353_v17  ;;  %v2482_v41 = vadd.f32 %v1658_v15, %v2051_v34  ;;  %v463_v28 = vmul.f32 %v1652_v11, %v398_v29  ;;  %v3361_v21 = vunpack.c.1.s8 %v3360_v22  ;;  %v2496_v34 = vpop.permute.xlu0 %174  ;;  %v3372_v22 = vld [vmem:[#allocation13_spill] sm:$0xff] }
  0xc0   :  { %vm2476_vm13 = vcmp.ne.s32.totalorder %v3357_v45, 0  ;;  %v444_v54 = vmul.f32 %v1652_v11, %v379_v30  ;;  %v323_v61 = vmul.f32 0.2, %v259_v37  ;;  %v404_v7 = vmax.f32 %v276_v19, %v340_v52 }
  0xc1   :  { %vm2469_vm12 = vcmp.ne.s32.totalorder %v3354_v1, 0  ;;  %v274_v1 = vadd.f32 %v1658_v15, %v2431_v20  ;;  %vm2489_vm14 = vcmp.ne.s32.totalorder %v3361_v21, 0  ;;  %v280_v45 = vadd.f32 %v1658_v15, %v2461_v16 }
  0xc2   :  { %v383_v10 = vmax.f32 %v255_v2, %v319_v50  ;;  %v317_v29 = vmul.f32 0.2, %v253_v43  ;;  %v3365_v4 = vunpack.c.0.s8 %v3364_v0  ;;  %v2506_v21 = vsel %vm2388_vm7, %v463_v28, -1e+30 }
  0xc3   :  { %3368 = vst [vmem:[#allocation9_spill] sm:$0xff] %v2506_v21  ;;  %v338_v30 = vmul.f32 0.2, %v274_v1  ;;  %v926_v52 = vmax.f32 %v2372_v51, %v2465_v38  ;;  %v377_v19 = vmax.f32 %v249_v47, %v313_v3  ;;  %v3369_v42 = vunpack.c.0.s8 %v1796_v5  ;;  %v3377_v38 = vld [vmem:[#allocation14_spill] sm:$0xff] }
  0xc4   :  { %vm2500_vm15 = vcmp.ne.s32.totalorder %v3365_v4, 0  ;;  %v979_v4 = vmax.f32 %v977_v27, %v2506_v21  ;;  %v469_v50 = vmul.f32 %v1652_v11, %v404_v7  ;;  %v3373_v56 = vunpack.c.1.s8 %v3372_v22  ;;  %v2550_v22 = vpop.permute.xlu0 %184 }
  0xc5   :  { %vm2512_vm0 = vcmp.ne.s32.totalorder %v3369_v42, 0  ;;  %v445_v28 = vmul.f32 %v1652_v11, %v380_v49  ;;  %v320_v51 = vmul.f32 0.2, %v2482_v41  ;;  %v402_v47 = vmax.f32 %v274_v1, %v338_v30  ;;  %v2526_v42 = vpop.permute.xlu1 %189 }
  0xc6   :  { %vm2520_vm1 = vcmp.ne.s32.totalorder %v3373_v56, 0  ;;  %v344_v5 = vmul.f32 0.2, %v280_v45  ;;  %v2530_v3 = vsel %vm2409_vm8, %v444_v54, -1e+30  ;;  %v387_v27 = vmax.f32 %v259_v37, %v323_v61 }
  0xc7   :  { %3376 = vst [vmem:[#allocation10_spill] sm:$0xff] %v2530_v3  ;;  %v2534_v7 = vsel %vm2421_vm9, %v469_v50, -1e+30  ;;  %v278_v56 = vadd.f32 %v1658_v15, %v2496_v34  ;;  %v3378_v49 = vunpack.c.1.s8 %v3377_v38  ;;  %v448_v1 = vmul.f32 %v1652_v11, %v383_v10 }
  0xc8   :  { %v381_v30 = vmax.f32 %v253_v43, %v317_v29  ;;  %v981_v46 = vmax.f32 %v979_v4, %v2534_v7  ;;  %v467_v37 = vmul.f32 %v1652_v11, %v402_v47  ;;  %v442_v57 = vmul.f32 %v1652_v11, %v377_v19 }
  0xc9   :  { %vm2540_vm2 = vcmp.ne.s32.totalorder %v3378_v49, 0  ;;  %v257_v54 = vadd.f32 %v1656_v14, %v2156_v24  ;;  %v408_v61 = vmax.f32 %v280_v45, %v344_v5  ;;  %v342_v50 = vmul.f32 0.2, %v278_v56 }
  0xca   :  { %v2554_v49 = vsel %vm2440_vm10, %v445_v28, -1e+30  ;;  %v3381_v43 = vmax.f32 %v2324_v32, %v2382_v31  ;;  %v2562_v29 = vsel %vm2451_vm11, %v467_v37, -1e+30  ;;  %v284_v24 = vadd.f32 %v1658_v15, %v2526_v42  ;;  %v3382_v28 = vld [vmem:[#allocation15_spill] sm:$0xff] }
  0xcb   :  { %v384_v45 = vmax.f32 %v2482_v41, %v320_v51  ;;  %v452_v19 = vmul.f32 %v1652_v11, %v387_v27  ;;  %v983_v40 = vmax.f32 %v981_v46, %v2562_v29  ;;  %v473_v4 = vmul.f32 %v1652_v11, %v408_v61  ;;  %v2581_v51 = vpop.permute.xlu1 %199 }
  0xcc   :  { %v929_v10 = vmax.f32 %v3381_v43, %v2530_v3  ;;  %v3383_v47 = vunpack.c.1.s8 %v3382_v28  ;;  %v2578_v23 = vsel %vm2469_vm12, %v448_v1, -1e+30  ;;  %v446_v5 = vmul.f32 %v1652_v11, %v381_v30 }
  0xcd   :  { %3386 = vst [vmem:[#allocation14_spill] sm:$0xff] %v2578_v23  ;;  %v406_v37 = vmax.f32 %v278_v56, %v342_v50  ;;  %v348_v41 = vmul.f32 0.2, %v284_v24  ;;  %v2585_v27 = vsel %vm2476_vm13, %v442_v57, -1e+30  ;;  %v282_v18 = vadd.f32 %v1658_v15, %v2550_v22 }
  0xce   :  { %vm2572_vm3 = vcmp.ne.s32.totalorder %v3383_v47, 0  ;;  %3387 = vst [vmem:[#allocation15_spill] sm:$0xff] %v2585_v27  ;;  %v321_v46 = vmul.f32 0.2, %v257_v54  ;;  %v2589_v61 = vsel %vm2489_vm14, %v473_v4, -1e+30  ;;  %v3389_v1 = vunpack.c.0.s8 %v1829_v62 }
  0xcf   :  { %3388 = vst [vmem:[#allocation46_spill] sm:$0xff] %v2589_v61  ;;  %v261_v56 = vadd.f32 %v1656_v14, %v2233_v8  ;;  %v985_v58 = vmax.f32 %v983_v40, %v2589_v61  ;;  %v471_v57 = vmul.f32 %v1652_v11, %v406_v37  ;;  %v412_v50 = vmax.f32 %v284_v24, %v348_v41  ;;  %v3393_v47 = vld [vmem:[#allocation16_spill] sm:$0xff]  ;;  %v2618_v40 = vpop.permute.xlu0 %194 }
  0xd0   :  { %vm2595_vm4 = vcmp.ne.s32.totalorder %v3389_v1, 0  ;;  %v931_v53 = vmax.f32 %v929_v10, %v2578_v23  ;;  %v2606_v43 = vadd.f32 %v1658_v15, %v2114_v36  ;;  %v2610_v62 = vsel %vm2500_vm15, %v452_v19, -1e+30  ;;  %v3410_v23 = vld [vmem:[#allocation27_spill] sm:$0xff]  ;;  %v3433_v8 = vld [vmem:[#allocation20_spill] sm:$0xff] }
  0xd1   :  { %3392 = vst [vmem:[#allocation47_spill] sm:$0xff] %v2610_v62  ;;  %v346_v4 = vmul.f32 0.2, %v282_v18  ;;  %v3394_v1 = vunpack.c.1.s8 %v3393_v47  ;;  %v2622_v10 = vsel %vm2512_vm0, %v446_v5, -1e+30  ;;  %v267_v36 = vadd.f32 %v1656_v14, %v2264_v6 }
  0xd2   :  { %3397 = vst [vmem:[#allocation16_spill] sm:$0xff] %v2622_v10  ;;  %v2628_v60 = vsel %vm2520_vm1, %v471_v57, -1e+30  ;;  %v477_v24 = vmul.f32 %v1652_v11, %v412_v50  ;;  %v385_v19 = vmax.f32 %v257_v54, %v321_v46  ;;  %v928_v2 = vmax.f32 %v926_v52, %v2585_v27  ;;  %v2646_v54 = vpop.permute.xlu1 %209 }
  0xd3   :  { %vm2614_vm5 = vcmp.ne.s32.totalorder %v3394_v1, 0  ;;  %v974_v37 = vmax.f32 %v2628_v60, %v985_v58  ;;  %v410_v41 = vmax.f32 %v282_v18, %v346_v4  ;;  %v288_v1 = vadd.f32 %v1658_v15, %v2581_v51  ;;  %v3406_v4 = vld [vmem:[#allocation18_spill] sm:$0xff] }
  0xd4   :  { %v933_v5 = vmax.f32 %v931_v53, %v2610_v62  ;;  %v325_v31 = vmul.f32 0.2, %v261_v56  ;;  %v2638_v6 = vsel %vm2540_vm2, %v477_v24, -1e+30  ;;  %v3400_v57 = vunpack.c.1.s8 %v3399_v35  ;;  %v2684_v62 = vpop.permute.xlu0 %204 }
  0xd5   :  { %3398 = vst [vmem:[#allocation48_spill] sm:$0xff] %v2638_v6  ;;  %v2649_v46 = vmul.f32 %v1652_v11, %v384_v45  ;;  %v324_v52 = vmul.f32 0.2, %v2606_v43  ;;  %v3403_v18 = vunpack.c.0.s8 %v1834_v63  ;;  %v976_v21 = vmax.f32 %v974_v37, %v2638_v6  ;;  %3414 = vst [vmem:[#allocation49_spill] sm:$0xff] %v2684_v62 }
  0xd6   :  { %vm2642_vm6 = vcmp.ne.s32.totalorder %v3400_v57, 0  ;;  %v475_v53 = vmul.f32 %v1652_v11, %v410_v41  ;;  %v3407_v24 = vunpack.c.1.s8 %v3406_v4  ;;  %v930_v45 = vmax.f32 %v928_v2, %v2622_v10 }
  0xd7   :  { %vm2654_vm7 = vcmp.ne.s32.totalorder %v3403_v18, 0  ;;  %v331_v27 = vmul.f32 0.2, %v267_v36  ;;  %v352_v3 = vmul.f32 0.2, %v288_v1  ;;  %v286_v63 = vadd.f32 %v1658_v15, %v2618_v40 }
  0xd8   :  { %vm2662_vm8 = vcmp.ne.s32.totalorder %v3407_v24, 0  ;;  %v450_v18 = vmul.f32 %v1652_v11, %v385_v19  ;;  %v2672_v37 = vadd.f32 %v1658_v15, %v3410_v23  ;;  %v3411_v41 = vunpack.c.0.s8 %v1837_v59  ;;  %v3416_v59 = vld [vmem:[#allocation19_spill] sm:$0xff] }
  0xd9   :  { %v265_v2 = vadd.f32 %v1656_v14, %v2302_v26  ;;  %v292_v10 = vadd.f32 %v1658_v15, %v2646_v54  ;;  %v932_v4 = vmax.f32 %v930_v45, %v933_v5  ;;  %v389_v19 = vmax.f32 %v261_v56, %v325_v31 }
  0xda   :  { %vm2676_vm9 = vcmp.ne.s32.totalorder %v3411_v41, 0  ;;  %v2688_v23 = vsel %vm2572_vm3, %v475_v53, -1e+30  ;;  %v416_v35 = vmax.f32 %v288_v1, %v352_v3  ;;  %v3417_v41 = vunpack.c.1.s8 %v3416_v59 }
  0xdb   :  { %3415 = vst [vmem:[#allocation50_spill] sm:$0xff] %v2688_v23  ;;  %v3420_v26 = vunpack.c.1.s8 %v3353_v17  ;;  %v271_v31 = vadd.f32 %v1656_v14, %v2332_v39  ;;  %v978_v32 = vmax.f32 %v976_v21, %v2688_v23  ;;  %v350_v56 = vmul.f32 0.2, %v286_v63 }
  0xdc   :  { %vm2692_vm10 = vcmp.ne.s32.totalorder %v3417_v41, 0  ;;  %v356_v5 = vmul.f32 0.2, %v292_v10  ;;  %v388_v3 = vmax.f32 %v2606_v43, %v324_v52  ;;  %v395_v1 = vmax.f32 %v267_v36, %v331_v27 }
  0xdd   :  { %vm2698_vm11 = vcmp.ne.s32.totalorder %v3420_v26, 0  ;;  %v481_v53 = vmul.f32 %v1652_v11, %v416_v35  ;;  %v290_v45 = vadd.f32 %v1658_v15, %v2684_v62  ;;  %v3423_v17 = vunpack.c.1.s8 %v3364_v0 }
  0xde   :  { %v2717_v39 = vsel %vm2595_vm4, %v450_v18, -1e+30  ;;  %v328_v21 = vmul.f32 0.2, %v2672_v37  ;;  %v329_v26 = vmul.f32 0.2, %v265_v2  ;;  %v414_v43 = vmax.f32 %v286_v63, %v350_v56  ;;  %v2737_v63 = vpop.permute.xlu1 %219 }
  0xdf   :  { %vm2711_vm12 = vcmp.ne.s32.totalorder %v3423_v17, 0  ;;  %v454_v27 = vmul.f32 %v1652_v11, %v389_v19  ;;  %v3426_v36 = vunpack.c.0.s8 %v1868_v12  ;;  %v2729_v0 = vsel %vm2614_vm5, %v481_v53, -1e+30  ;;  %v3429_v18 = vld [vmem:[#allocation21_spill] sm:$0xff] }
  0xe0   :  { %v420_v52 = vmax.f32 %v292_v10, %v356_v5  ;;  %v354_v30 = vmul.f32 0.2, %v290_v45  ;;  %v3430_v17 = vunpack.c.1.s8 %v3429_v18  ;;  %v934_v12 = vmax.f32 %v932_v4, %v2717_v39 }
  0xe1   :  { %vm2723_vm13 = vcmp.ne.s32.totalorder %v3426_v36, 0  ;;  %v335_v19 = vmul.f32 0.2, %v271_v31  ;;  %v980_v56 = vmax.f32 %v978_v32, %v2729_v0  ;;  %v479_v36 = vmul.f32 %v1652_v11, %v414_v43 }
  0xe2   :  { %vm2733_vm14 = vcmp.ne.s32.totalorder %v3430_v17, 0  ;;  %v3434_v53 = vunpack.c.1.s8 %v3433_v8  ;;  %v453_v5 = vmul.f32 %v1652_v11, %v388_v3  ;;  %v460_v17 = vmul.f32 %v1652_v11, %v395_v1  ;;  %v2765_v1 = vpop.permute.xlu0 %214 }
  0xe3   :  { %v485_v18 = vmul.f32 %v1652_v11, %v420_v52  ;;  %v418_v62 = vmax.f32 %v290_v45, %v354_v30  ;;  %v393_v23 = vmax.f32 %v265_v2, %v329_v26  ;;  %v3437_v4 = vunpack.c.0.s8 %v1873_v25 }
  0xe4   :  { %vm2744_vm15 = vcmp.ne.s32.totalorder %v3434_v53, 0  ;;  %v269_v43 = vadd.f32 %v1656_v14, %v2366_v55  ;;  %v2761_v53 = vsel %vm2642_vm6, %v479_v36, -1e+30  ;;  %v296_v3 = vadd.f32 %v1658_v15, %v2737_v63 }
  0xe5   :  { %vm2753_vm0 = vcmp.ne.s32.totalorder %v3437_v4, 0  ;;  %v392_v2 = vmax.f32 %v2672_v37, %v328_v21  ;;  %v2770_v25 = vsel %vm2654_vm7, %v454_v27, -1e+30  ;;  %v982_v45 = vmax.f32 %v980_v56, %v2761_v53  ;;  %v3441_v56 = vld [vmem:[#allocation22_spill] sm:$0xff] }
  0xe6   :  { %v2775_v55 = vsel %vm2662_vm8, %v485_v18, -1e+30  ;;  %v936_v50 = vmax.f32 %v934_v12, %v2770_v25  ;;  %v399_v26 = vmax.f32 %v271_v31, %v335_v19  ;;  %v483_v52 = vmul.f32 %v1652_v11, %v418_v62 }
  0xe7   :  { %v360_v30 = vmul.f32 0.2, %v296_v3  ;;  %v2781_v36 = vsel %vm2676_vm9, %v460_v17, -1e+30  ;;  %v275_v58 = vadd.f32 %v1656_v14, %v2399_v48  ;;  %v984_v37 = vmax.f32 %v982_v45, %v2775_v55 }
  0xe8   :  { %v294_v57 = vadd.f32 %v1658_v15, %v2765_v1  ;;  %v458_v21 = vmul.f32 %v1652_v11, %v393_v23  ;;  %v333_v27 = vmul.f32 0.2, %v269_v43  ;;  %v2791_v31 = vsel %vm2692_vm10, %v483_v52, -1e+30 }
  0xe9   :  { %v424_v62 = vmax.f32 %v296_v3, %v360_v30  ;;  %v2796_v24 = vsel %vm2698_vm11, %v2649_v46, -1e+30  ;;  %v457_v48 = vmul.f32 %v1652_v11, %v392_v2  ;;  %v986_v18 = vmax.f32 %v984_v37, %v2791_v31 }
  0xea   :  { %v358_v12 = vmul.f32 0.2, %v294_v57  ;;  %v3440_v15 = vmax.f32 %v2361_v33, %v2394_v13  ;;  %v938_v6 = vmax.f32 %v936_v50, %v2781_v36  ;;  %v3442_v17 = vunpack.c.1.s8 %v3441_v56 }
  0xeb   :  { %v489_v19 = vmul.f32 %v1652_v11, %v424_v62  ;;  %v2814_v46 = vsel %vm2711_vm12, %v453_v5, -1e+30  ;;  %v464_v4 = vmul.f32 %v1652_v11, %v399_v26  ;;  %v339_v3 = vmul.f32 0.2, %v275_v58 }
  0xec   :  { %v966_v23 = vmax.f32 %v3440_v15, %v2554_v49  ;;  %vm2808_vm1 = vcmp.ne.s32.totalorder %v3442_v17, 0  ;;  %v422_v2 = vmax.f32 %v294_v57, %v358_v12  ;;  %v2820_v45 = vsel %vm2723_vm13, %v458_v21, -1e+30 }
  0xed   :  { %v397_v50 = vmax.f32 %v269_v43, %v333_v27  ;;  %v2824_v52 = vsel %vm2733_vm14, %v489_v19, -1e+30  ;;  %v273_v41 = vadd.f32 %v1656_v14, %v2431_v20  ;;  %v2832_v30 = vsel %vm2744_vm15, %v457_v48, -1e+30  ;;  %v3445_v19 = vld [vmem:[#allocation11_spill] sm:$0xff] }
  0xee   :  { %v968_v33 = vmax.f32 %v966_v23, %v2796_v24  ;;  %v987_v5 = vmax.f32 %v2824_v52, %v986_v18  ;;  %v487_v26 = vmul.f32 %v1652_v11, %v422_v2  ;;  %v940_v35 = vmax.f32 %v938_v6, %v2820_v45 }
  0xef   :  { %v766_v37 = vunpack.c.0.s8 %v1913_v44  ;;  %v2839_v59 = vsel %vm2753_vm0, %v464_v4, -1e+30  ;;  %v403_v57 = vmax.f32 %v275_v58, %v339_v3  ;;  %v279_v20 = vadd.f32 %v1656_v14, %v2461_v16 }
  0xf0   :  { %v970_v43 = vmax.f32 %v968_v33, %v2814_v46  ;;  %v2845_v21 = vsel %vm2808_vm1, %v487_v26, -1e+30  ;;  %v772_v10 = vunpack.c.0.s8 %v1918_v9  ;;  %v462_v62 = vmul.f32 %v1652_v11, %v397_v50  ;;  %v3446_v33 = vld [vmem:[#allocation12_spill] sm:$0xff] }
  0xf1   :  { %v988_v27 = vmax.f32 %v2845_v21, %v987_v5  ;;  %v337_v48 = vmul.f32 0.2, %v273_v41  ;;  %v942_v32 = vmax.f32 %v940_v35, %v2839_v59  ;;  %vm830_vm2 = vcmp.ne.s32.totalorder %v766_v37, 0 }
  0xf2   :  { %v972_v44 = vmax.f32 %v970_v43, %v2832_v30  ;;  %v468_v18 = vmul.f32 %v1652_v11, %v403_v57  ;;  %v343_v16 = vmul.f32 0.2, %v279_v20  ;;  %vm836_vm3 = vcmp.ne.s32.totalorder %v772_v10, 0 }
  0xf3   :  { %v2853_v15 = vsel %vm830_vm2, %v462_v62, -1e+30  ;;  %v401_v23 = vmax.f32 %v273_v41, %v337_v48  ;;  %v277_v9 = vadd.f32 %v1656_v14, %v2496_v34  ;;  %v770_v17 = vunpack.c.0.s8 %v3445_v19 }
  0xf4   :  { %v989_v58 = vmax.f32 %v972_v44, %v988_v27  ;;  %v944_v6 = vmax.f32 %v942_v32, %v2853_v15  ;;  %v2859_v4 = vsel %vm836_vm3, %v468_v18, -1e+30  ;;  %v407_v3 = vmax.f32 %v279_v20, %v343_v16  ;;  %v3447_v44 = vld [vmem:[#allocation13_spill] sm:$0xff] }
  0xf5   :  { %v283_v2 = vadd.f32 %v1656_v14, %v2526_v42  ;;  %v776_v50 = vunpack.c.0.s8 %v3446_v33  ;;  %v466_v26 = vmul.f32 %v1652_v11, %v401_v23  ;;  %v341_v41 = vmul.f32 0.2, %v277_v9 }
  0xf6   :  { %v990_v12 = vrot.slane %v989_v58, 4  ;;  %v946_v35 = vmax.f32 %v944_v6, %v2859_v4  ;;  %vm834_vm4 = vcmp.ne.s32.totalorder %v770_v17, 0  ;;  %v472_v37 = vmul.f32 %v1652_v11, %v407_v3 }
  0xf7   :  { %v347_v43 = vmul.f32 0.2, %v283_v2  ;;  %vm840_vm5 = vcmp.ne.s32.totalorder %v776_v50, 0  ;;  %v281_v57 = vadd.f32 %v1656_v14, %v2550_v22  ;;  %v2869_v10 = vsel %vm834_vm4, %v466_v26, -1e+30 }
  0xf8   :  { %v991_v61 = vmax.f32 %v989_v58, %v990_v12  ;;  %v405_v42 = vmax.f32 %v277_v9, %v341_v41  ;;  %v948_v27 = vmax.f32 %v946_v35, %v2869_v10  ;;  %v774_v62 = vunpack.c.0.s8 %v3447_v44  ;;  %v3448_v41 = vld [vmem:[#allocation9_spill] sm:$0xff] }
  0xf9   :  { %v2875_v32 = vsel %vm840_vm5, %v472_v37, -1e+30  ;;  %v411_v58 = vmax.f32 %v283_v2, %v347_v43  ;;  %v287_v18 = vadd.f32 %v1656_v14, %v2581_v51  ;;  %v780_v16 = vunpack.c.0.s8 %v3377_v38 }
  0xfa   :  { %v992_v5 = vrot.slane %v991_v61, 2  ;;  %v345_v12 = vmul.f32 0.2, %v281_v57  ;;  %v470_v23 = vmul.f32 %v1652_v11, %v405_v42  ;;  %v935_v9 = vmax.f32 %v2875_v32, %v948_v27  ;;  %v3450_v42 = vld [vmem:[#allocation50_spill] sm:$0xff] }
  0xfb   :  { %vm838_vm6 = vcmp.ne.s32.totalorder %v774_v62, 0  ;;  %v476_v6 = vmul.f32 %v1652_v11, %v411_v58  ;;  %v351_v19 = vmul.f32 0.2, %v287_v18  ;;  %vm844_vm7 = vcmp.ne.s32.totalorder %v780_v16, 0  ;;  %v3451_v62 = vld [vmem:[#allocation48_spill] sm:$0xff] }
  0xfc   :  { %v993_v34 = vmax.f32 %v991_v61, %v992_v5  ;;  %v409_v17 = vmax.f32 %v281_v57, %v345_v12  ;;  %v2885_v61 = vsel %vm838_vm6, %v470_v23, -1e+30  ;;  %v778_v51 = vunpack.c.0.s8 %v3382_v28  ;;  %v3452_v12 = vld [vmem:[#allocation49_spill] sm:$0xff] }
  0xfd   :  { %v285_v38 = vadd.f32 %v1656_v14, %v2618_v40  ;;  %v937_v3 = vmax.f32 %v935_v9, %v2885_v61  ;;  %v2891_v2 = vsel %vm844_vm7, %v476_v6, -1e+30  ;;  %v415_v33 = vmax.f32 %v287_v18, %v351_v19 }
  0xfe   :  { %v994_v20 = vrot.slane %v993_v34, 1  ;;  %v291_v50 = vadd.f32 %v1656_v14, %v2646_v54  ;;  %v474_v5 = vmul.f32 %v1652_v11, %v409_v17  ;;  %v784_v26 = vunpack.c.0.s8 %v3393_v47  ;;  %v3449_v47 = vld [vmem:[#allocation46_spill] sm:$0xff]  ;;  %v3453_v17 = vld [vmem:[#allocation17_spill] sm:$0xff] }
  0xff   :  { %vm842_vm8 = vcmp.ne.s32.totalorder %v778_v51, 0  ;;  %v349_v28 = vmul.f32 0.2, %v285_v38  ;;  %v480_v43 = vmul.f32 %v1652_v11, %v415_v33  ;;  %v289_v23 = vadd.f32 %v1656_v14, %v3452_v12 }
 0x100   :  { %v2873_v48 = vmax.f32 %v993_v34, %v994_v20  ;;  %v939_v34 = vmax.f32 %v937_v3, %v2891_v2  ;;  %v355_v57 = vmul.f32 0.2, %v291_v50  ;;  %v2911_v44 = vsel %vm842_vm8, %v474_v5, -1e+30 }
 0x101   :  { %vm848_vm9 = vcmp.ne.s32.totalorder %v784_v26, 0  ;;  %v413_v16 = vmax.f32 %v285_v38, %v349_v28  ;;  %v782_v51 = vunpack.c.0.s8 %v3453_v17  ;;  %v3454_v38 = vld [vmem:[#allocation18_spill] sm:$0xff]  ;;  %v3455_v28 = vld [vmem:[#allocation27_spill] sm:$0xff]  ;;  %v353_v40 = vmul.f32 0.2, %v289_v23 }
 0x102   :  { %v1057_v22 = vsub.f32 %v2845_v21, %v2873_v48  ;;  %v1045_v27 = vsub.f32 %v3450_v42, %v2873_v48  ;;  %v1047_v58 = vsub.f32 %v3451_v62, %v2873_v48  ;;  %v1049_v18 = vsub.f32 %v2761_v53, %v2873_v48 }
 0x103   :  { %v1051_v9 = vsub.f32 %v2729_v0, %v2873_v48  ;;  %v1053_v6 = vsub.f32 %v2791_v31, %v2873_v48  ;;  %v941_v19 = vmax.f32 %v939_v34, %v2911_v44  ;;  %v1055_v3 = vsub.f32 %v2775_v55, %v2873_v48 }
 0x104   :  { %v2927_v33 = vsel %vm848_vm9, %v480_v43, -1e+30  ;;  %v419_v5 = vmax.f32 %v291_v50, %v355_v57  ;;  %v788_v26 = vunpack.c.0.s8 %v3454_v38  ;;  %v263_v12 = vadd.f32 %v1656_v14, %v3455_v28  ;;  %v3456_v38 = vld [vmem:[#allocation19_spill] sm:$0xff] }
 0x105   :  { %v478_v35 = vmul.f32 %v1652_v11, %v413_v16  ;;  %v943_v37 = vmax.f32 %v941_v19, %v2927_v33  ;;  %vm846_vm10 = vcmp.ne.s32.totalorder %v782_v51, 0  ;;  %v417_v43 = vmax.f32 %v289_v23, %v353_v40 }
 0x106   :  { %v484_v34 = vmul.f32 %v1652_v11, %v419_v5  ;;  %vm852_vm11 = vcmp.ne.s32.totalorder %v788_v26, 0  ;;  %v327_v17 = vmul.f32 0.2, %v263_v12  ;;  %v295_v50 = vadd.f32 %v1656_v14, %v2737_v63 }
 0x107   :  { %v2935_v54 = vsel %vm846_vm10, %v478_v35, -1e+30  ;;  %v786_v28 = vunpack.c.0.s8 %v3456_v38  ;;  %v482_v19 = vmul.f32 %v1652_v11, %v417_v43  ;;  %v293_v5 = vadd.f32 %v1656_v14, %v2765_v1 }
 0x108   :  { %v945_v57 = vmax.f32 %v943_v37, %v2935_v54  ;;  %v2941_v20 = vsel %vm852_vm11, %v484_v34, -1e+30  ;;  %v391_v16 = vmax.f32 %v263_v12, %v327_v17  ;;  %v359_v51 = vmul.f32 0.2, %v295_v50  ;;  %v3457_v12 = vld [vmem:[#allocation21_spill] sm:$0xff] }
 0x109   :  { %vm850_vm12 = vcmp.ne.s32.totalorder %v786_v28, 0  ;;  %v760_v40 = vunpack.c.0.s8 %v3433_v8  ;;  %v357_v26 = vmul.f32 0.2, %v293_v5  ;;  %v792_v17 = vunpack.c.0.s8 %v3457_v12  ;;  %v1189_v8 = vld [vmem:[%s3116_s2 + $0x8] sm:$0xff] }
 0x10a   :  { %v947_v35 = vmax.f32 %v945_v57, %v2941_v20  ;;  %v456_v63 = vmul.f32 %v1652_v11, %v391_v16  ;;  %v2949_v23 = vsel %vm850_vm12, %v482_v19, -1e+30  ;;  %v423_v37 = vmax.f32 %v295_v50, %v359_v51  ;;  %1254 = vmatprep.mubr.f32.mxu0 %v1189_v8 }
 0x10b   :  { %vm824_vm13 = vcmp.ne.s32.totalorder %v760_v40, 0  ;;  %v421_v14 = vmax.f32 %v293_v5, %v357_v26  ;;  %vm856_vm14 = vcmp.ne.s32.totalorder %v792_v17, 0  ;;  %v790_v57 = vunpack.c.0.s8 %v3441_v56  ;;  %v3458_v17 = vld [vmem:[#allocation40_spill] sm:$0xff] }
 0x10c   :  { %v949_v34 = vmax.f32 %v947_v35, %v2949_v23  ;;  %v488_v43 = vmul.f32 %v1652_v11, %v423_v37  ;;  %v888_v38 = vsel %vm824_vm13, %v456_v63, -1e+30  ;;  %v1027_v19 = vsub.f32 %v2832_v30, %v2873_v48 }
 0x10d   :  { %v486_v28 = vmul.f32 %v1652_v11, %v421_v14  ;;  %vm854_vm15 = vcmp.ne.s32.totalorder %v790_v57, 0  ;;  %v1025_v30 = vsub.f32 %v3458_v17, %v2873_v48  ;;  %v1023_v14 = vsub.f32 %v2814_v46, %v2873_v48 }
 0x10e   :  { %v951_v1 = vmax.f32 %v949_v34, %v888_v38  ;;  %v2958_v50 = vsel %vm856_vm14, %v488_v43, -1e+30  ;;  %v1122_v56 = vmul.f32 1.442695, %v1027_v19 }
 0x10f   :  { %v2964_v51 = vsel %vm854_vm15, %v486_v28, -1e+30  ;;  %v3460_v28 = vld [vmem:[#allocation39_spill] sm:$0xff]  ;;  %v1118_v19 = vmul.f32 1.442695, %v1025_v30  ;;  %v3464_v30 = vld [vmem:[#allocation10_spill] sm:$0xff] }
 0x110   :  { %v950_v16 = vmax.f32 %v2958_v50, %v951_v1  ;;  %1319 = vpow2.f32 %v1122_v56  ;;  %v3459_v1 = vld [vmem:[#allocation47_spill] sm:$0xff]  ;;  %v1019_v56 = vsub.f32 %v2796_v24, %v2873_v48 }
 0x112   :  { %v952_v5 = vmax.f32 %v950_v16, %v2964_v51  ;;  %v1021_v16 = vsub.f32 %v3460_v28, %v2873_v48  ;;  %v1106_v24 = vmul.f32 1.442695, %v1019_v56  ;;  %v3466_v28 = vld [vmem:[#allocation15_spill] sm:$0xff] }
 0x114   :  { %v953_v35 = vrot.slane %v952_v5, 4 }
 0x116   :  { %v954_v40 = vmax.f32 %v952_v5, %v953_v35  ;;  %v1114_v35 = vmul.f32 1.442695, %v1023_v14 }
 0x118   :  { %v955_v63 = vrot.slane %v954_v40, 2 }
 0x11a   :  { %v956_v37 = vmax.f32 %v954_v40, %v955_v63  ;;  %v3462_v63 = vld [vmem:[#allocation37_spill] sm:$0xff] }
 0x11c   :  { %v957_v34 = vrot.slane %v956_v37, 1 }
 0x11d   :  { %v1320_v26 = vpop.eup %1319 }
 0x11e   :  { %1190 = vmatprep.subr.mxu0 %v1320_v26  ;;  %v2967_v11 = vmax.f32 %v956_v37, %v957_v34  ;;  %v1017_v37 = vsub.f32 %v3462_v63, %v2873_v48  ;;  %v1110_v26 = vmul.f32 1.442695, %v1021_v16  ;;  %v3463_v34 = vld [vmem:[#allocation16_spill] sm:$0xff]  ;;  %v3469_v63 = vld [vmem:[#allocation45_spill] sm:$0xff] }
 0x120   :  { %v1026_v12 = vsub.f32 %v888_v38, %v2967_v11  ;;  %v1024_v43 = vsub.f32 %v2770_v25, %v2967_v11  ;;  %v1022_v57 = vsub.f32 %v3459_v1, %v2967_v11  ;;  %v1020_v38 = vsub.f32 %v2717_v39, %v2967_v11  ;;  %v3461_v25 = vld [vmem:[#allocation14_spill] sm:$0xff]  ;;  %v3465_v1 = vld [vmem:[#allocation35_spill] sm:$0xff] }
 0x121   :  { %v1018_v40 = vsub.f32 %v3461_v25, %v2967_v11  ;;  %v1015_v39 = vsub.f32 %v2554_v49, %v2873_v48  ;;  %v1012_v16 = vsub.f32 %v3466_v28, %v2967_v11  ;;  %v1011_v49 = vsub.f32 %v2394_v13, %v2873_v48  ;;  %v3468_v25 = vld [vmem:[#allocation33_spill] sm:$0xff] }
 0x122   :  { %v1120_v8 = vmul.f32 1.442695, %v1026_v12  ;;  %v1116_v5 = vmul.f32 1.442695, %v1024_v43  ;;  %v1112_v46 = vmul.f32 1.442695, %v1022_v57  ;;  %v1016_v12 = vsub.f32 %v3463_v34, %v2967_v11 }
 0x123   :  { %v1108_v17 = vmul.f32 1.442695, %v1020_v38  ;;  %v1014_v43 = vsub.f32 %v3464_v30, %v2967_v11  ;;  %v1104_v14 = vmul.f32 1.442695, %v1018_v40  ;;  %v1013_v57 = vsub.f32 %v3465_v1, %v2873_v48  ;;  %v3470_v34 = vld [vmem:[#allocation36_spill] sm:$0xff] }
 0x124   :  { %1321 = vpow2.f32 %v1120_v8  ;;  %v1102_v8 = vmul.f32 1.442695, %v1017_v37  ;;  %v1098_v38 = vmul.f32 1.442695, %v1015_v39  ;;  %v1009_v40 = vsub.f32 %v3468_v25, %v2873_v48 }
 0x125   :  { %1323 = vpow2.f32 %v1118_v19  ;;  %v1100_v19 = vmul.f32 1.442695, %v1016_v12  ;;  %v1008_v37 = vsub.f32 %v3469_v63, %v2967_v11  ;;  %v1007_v13 = vsub.f32 %v3470_v34, %v2873_v48  ;;  %v3476_v63 = vld [vmem:[#allocation25_spill] sm:$0xff] }
 0x126   :  { %1325 = vpow2.f32 %v1116_v5  ;;  %v3467_v5 = vld [vmem:[#allocation41_spill] sm:$0xff]  ;;  %v1090_v12 = vmul.f32 1.442695, %v1011_v49  ;;  %v1086_v1 = vmul.f32 1.442695, %v1009_v40  ;;  %v3474_v49 = vld [vmem:[#allocation30_spill] sm:$0xff]  ;;  %v1050_v21 = vsub.f32 %v2927_v33, %v2967_v11 }
 0x127   :  { %1327 = vpow2.f32 %v1114_v35  ;;  %v1010_v56 = vsub.f32 %v3467_v5, %v2967_v11  ;;  %v1096_v35 = vmul.f32 1.442695, %v1014_v43  ;;  %v3472_v43 = vld [vmem:[#allocation31_spill] sm:$0xff]  ;;  %v1082_v5 = vmul.f32 1.442695, %v1007_v13 }
 0x128   :  { %1329 = vpow2.f32 %v1112_v46  ;;  %v1094_v46 = vmul.f32 1.442695, %v1013_v57  ;;  %v1048_v55 = vsub.f32 %v2935_v54, %v2967_v11  ;;  %v1170_v33 = vmul.f32 1.442695, %v1051_v9 }
 0x129   :  { %1331 = vpow2.f32 %v1110_v26  ;;  %v1092_v26 = vmul.f32 1.442695, %v1012_v16  ;;  %v1084_v16 = vmul.f32 1.442695, %v1008_v37  ;;  %v1001_v37 = vsub.f32 %v3476_v63, %v2873_v48 }
 0x12a   :  { %1333 = vpow2.f32 %v1108_v17  ;;  %v3471_v17 = vld [vmem:[#allocation34_spill] sm:$0xff]  ;;  %v1046_v31 = vsub.f32 %v2891_v2, %v2967_v11  ;;  %v1166_v54 = vmul.f32 1.442695, %v1049_v18  ;;  %v1044_v0 = vsub.f32 %v2911_v44, %v2967_v11 }
 0x12b   :  { %1335 = vpow2.f32 %v1106_v24  ;;  %v1006_v39 = vsub.f32 %v3471_v17, %v2967_v11  ;;  %v1088_v24 = vmul.f32 1.442695, %v1010_v56  ;;  %v3477_v17 = vld [vmem:[#allocation23_spill] sm:$0xff]  ;;  %v1164_v9 = vmul.f32 1.442695, %v1048_v55 }
 0x12c   :  { %1337 = vpow2.f32 %v1104_v14  ;;  %v1005_v14 = vsub.f32 %v3472_v43, %v2873_v48  ;;  %v1000_v13 = vsub.f32 %v3477_v17, %v2967_v11  ;;  %v3478_v43 = vld [vmem:[#allocation32_spill] sm:$0xff]  ;;  %v1162_v2 = vmul.f32 1.442695, %v1047_v58 }
 0x12d   :  { %1339 = vpow2.f32 %v1102_v8  ;;  %v3473_v8 = vld [vmem:[#allocation38_spill] sm:$0xff]  ;;  %v1080_v40 = vmul.f32 1.442695, %v1006_v39  ;;  %v999_v39 = vsub.f32 %v3478_v43, %v2873_v48  ;;  %v1042_v53 = vsub.f32 %v2875_v32, %v2967_v11 }
 0x12e   :  { %1341 = vpow2.f32 %v1100_v19  ;;  %v1004_v28 = vsub.f32 %v3473_v8, %v2967_v11  ;;  %v3479_v8 = vld [vmem:[#allocation29_spill] sm:$0xff]  ;;  %v1160_v18 = vmul.f32 1.442695, %v1046_v31  ;;  %v1158_v44 = vmul.f32 1.442695, %v1045_v27 }
 0x12f   :  { %1343 = vpow2.f32 %v1098_v38  ;;  %v1003_v38 = vsub.f32 %v3474_v49, %v2873_v48  ;;  %v3480_v49 = vld [vmem:[#allocation26_spill] sm:$0xff]  ;;  %v1040_v62 = vsub.f32 %v2885_v61, %v2967_v11  ;;  %v1156_v58 = vmul.f32 1.442695, %v1044_v0 }
 0x130   :  { %1345 = vpow2.f32 %v1096_v35  ;;  %v3475_v35 = vld [vmem:[#allocation28_spill] sm:$0xff]  ;;  %v3482_v32 = vsub.f32 %v3449_v47, %v2873_v48  ;;  %v1038_v42 = vsub.f32 %v2859_v4, %v2967_v11  ;;  %v1152_v27 = vmul.f32 1.442695, %v1042_v53 }
 0x131   :  { %v1322_v30 = vpop.eup %1321  ;;  %1347 = vpow2.f32 %v1094_v46  ;;  %v1002_v25 = vsub.f32 %v3475_v35, %v2967_v11  ;;  %v3481_v35 = vld [vmem:[#allocation24_spill] sm:$0xff]  ;;  %v3483_v61 = vsub.f32 %v2628_v60, %v2873_v48  ;;  %v1036_v47 = vsub.f32 %v2869_v10, %v2967_v11 }
 0x132   :  { %v1324_v57 = vpop.eup %1323  ;;  %1349 = vpow2.f32 %v1092_v26  ;;  %1191 = vmatpush1.msra.mxu0 %v1322_v30  ;;  %v1078_v26 = vmul.f32 1.442695, %v1005_v14  ;;  %v998_v14 = vsub.f32 %v3479_v8, %v2967_v11  ;;  %v1182_v8 = vmul.f32 1.442695, %v1057_v22  ;;  %v3484_v4 = vld [vmem:[#allocation44_spill] sm:$0xff] }
 0x133   :  { %v1326_v19 = vpop.eup %1325  ;;  %1351 = vpow2.f32 %v1090_v12  ;;  %1192 = vmatprep.subr.mxu0 %v1324_v57  ;;  %v1076_v12 = vmul.f32 1.442695, %v1004_v28  ;;  %v997_v28 = vsub.f32 %v3480_v49, %v2873_v48 }
 0x134   :  { %v1328_v56 = vpop.eup %1327  ;;  %1353 = vpow2.f32 %v1088_v24  ;;  %1193 = vmatpush1.msra.mxu0 %v1326_v19  ;;  %v1074_v24 = vmul.f32 1.442695, %v1003_v38  ;;  %v996_v38 = vsub.f32 %v3481_v35, %v2967_v11 }
 0x135   :  { %v1330_v46 = vpop.eup %1329  ;;  %1355 = vpow2.f32 %v1086_v1  ;;  %1194 = vmatprep.subr.mxu0 %v1328_v56  ;;  %v1072_v1 = vmul.f32 1.442695, %v1002_v25  ;;  %v1059_v25 = vsub.f32 %v2824_v52, %v2873_v48  ;;  %v1062_v17 = vmul.f32 1.442695, %v997_v28 }
 0x136   :  { %v1332_v34 = vpop.eup %1331  ;;  %1357 = vpow2.f32 %v1084_v16  ;;  %1195 = vmatpush1.msra.mxu0 %v1330_v46  ;;  %v1070_v16 = vmul.f32 1.442695, %v1001_v37  ;;  %v1058_v37 = vsub.f32 %v2958_v50, %v2967_v11  ;;  %v1054_v50 = vsub.f32 %v2941_v20, %v2967_v11 }
 0x137   :  { %v1334_v30 = vpop.eup %1333  ;;  %1359 = vpow2.f32 %v1082_v5  ;;  %1196 = vmatprep.subr.mxu0 %v1332_v34  ;;  %v1068_v5 = vmul.f32 1.442695, %v1000_v13  ;;  %v1186_v43 = vmul.f32 1.442695, %v1059_v25  ;;  %v1178_v20 = vmul.f32 1.442695, %v1055_v3 }
 0x138   :  { %v1336_v57 = vpop.eup %1335  ;;  %1361 = vpow2.f32 %v1080_v40  ;;  %1197 = vmatpush1.msra.mxu0 %v1334_v30  ;;  %v1066_v40 = vmul.f32 1.442695, %v999_v39  ;;  %v1060_v30 = vmul.f32 1.442695, %v996_v38  ;;  %v1176_v22 = vmul.f32 1.442695, %v1054_v50 }
 0x139   :  { %v1338_v19 = vpop.eup %1337  ;;  %1363 = vpow2.f32 %v1078_v26  ;;  %1198 = vmatprep.subr.mxu0 %v1336_v57  ;;  %v1064_v26 = vmul.f32 1.442695, %v998_v14 }
 0x13a   :  { %v1340_v56 = vpop.eup %1339  ;;  %1365 = vpow2.f32 %v1076_v12  ;;  %1199 = vmatpush1.msra.mxu0 %v1338_v19  ;;  %v1056_v12 = vsub.f32 %v2964_v51, %v2967_v11 }
 0x13b   :  { %v1342_v46 = vpop.eup %1341  ;;  %1367 = vpow2.f32 %v1074_v24  ;;  %1200 = vmatprep.subr.mxu0 %v1340_v56  ;;  %v1184_v24 = vmul.f32 1.442695, %v1058_v37 }
 0x13c   :  { %v1344_v63 = vpop.eup %1343  ;;  %1369 = vpow2.f32 %v1072_v1  ;;  %1201 = vmatpush1.msra.mxu0 %v1342_v46  ;;  %v1180_v14 = vmul.f32 1.442695, %v1056_v12  ;;  %v1052_v1 = vsub.f32 %v2949_v23, %v2967_v11  ;;  %v1174_v23 = vmul.f32 1.442695, %v1053_v6 }
 0x13d   :  { %v1346_v34 = vpop.eup %1345  ;;  %1371 = vpow2.f32 %v1070_v16  ;;  %1202 = vmatprep.subr.mxu0 %v1344_v63  ;;  %v1168_v6 = vmul.f32 1.442695, %v1050_v21 }
 0x13e   :  { %v1348_v13 = vpop.eup %1347  ;;  %1373 = vpow2.f32 %v1068_v5  ;;  %1203 = vmatpush1.msra.mxu0 %v1346_v34  ;;  %v1172_v3 = vmul.f32 1.442695, %v1052_v1  ;;  %v1140_v1 = vmul.f32 1.442695, %v1036_v47 }
 0x13f   :  { %v1350_v52 = vpop.eup %1349  ;;  %1375 = vpow2.f32 %v1066_v40  ;;  %1204 = vmatprep.subr.mxu0 %v1348_v13  ;;  %v1150_v13 = vmul.f32 1.442695, %v3483_v61  ;;  %v1489_v61 = vmov 1966171168  }
 0x140   :  { %v1352_v39 = vpop.eup %1351  ;;  %1377 = vpow2.f32 %v1064_v26  ;;  %1205 = vmatpush1.msra.mxu0 %v1350_v52  ;;  %v1154_v26 = vmul.f32 1.442695, %v3482_v32  ;;  %v1188_v32 = vld [vmem:[%s3116_s2] sm:$0xff]  ;;  %s1490_s2 = smov [#allocation4]  }
 0x141   :  { %v1354_v57 = vpop.eup %1353  ;;  %1379 = vpow2.f32 %v1062_v17  ;;  %1206 = vmatprep.subr.mxu0 %v1352_v39  ;;  %v3485_v39 = vsub.f32 %v2534_v7, %v2873_v48  ;;  %v1032_v7 = vsub.f32 %v2853_v15, %v2967_v11  ;;  %v3488_v15 = vld [vmem:[#allocation43_spill] sm:$0xff]  ;;  %s1304_s19 = sshll.u32 %s1490_s2, 4  ;;  %s1305_s19 = int_to_ptr.vmem [resolvable:$true] %s1304_s19 }
 0x142   :  { %v1356_v51 = vpop.eup %1355  ;;  %1381 = vpow2.f32 %v1060_v30  ;;  %1207 = vmatpush1.msra.mxu0 %v1354_v57  ;;  %v1148_v30 = vmul.f32 1.442695, %v1040_v62  ;;  %v1144_v57 = vmul.f32 1.442695, %v1038_v42  ;;  %s1463_s20 = scalar_lea.vmem %s1305_s19, 32  ;;  %p1468_p6 = scmp.lt.s32.totalorder %s1305_s19, %s1305_s19 }
 0x143   :  { %v1358_v19 = vpop.eup %1357  ;;  %1383 = vpow2.f32 %v1186_v43  ;;  %1208 = vmatprep.subr.mxu0 %v1356_v51  ;;  %v1035_v43 = vsub.f32 %v3484_v4, %v2873_v48  ;;  %v1146_v50 = vmul.f32 1.442695, %v3485_v39  ;;  %v1271_v4 = vstv %s1312_s18  ;;  %p1464_p5 = scmp.ne.s32.totalorder %s1305_s19, %s1463_s20  ;;  %p1469_p7 = scmp.lt.s32.totalorder %s1463_s20, %s1463_s20 }
 0x144   :  { %v1360_v49 = vpop.eup %1359  ;;  %1385 = vpow2.f32 %v1184_v24  ;;  %1209 = vmatpush1.msra.mxu0 %v1358_v19  ;;  %v1034_v24 = vsub.f32 %v2839_v59, %v2967_v11  ;;  %v3487_v59 = vld [vmem:[#allocation42_spill] sm:$0xff] }
 0x145   :  { %v1362_v28 = vpop.eup %1361  ;;  %1387 = vpow2.f32 %v1182_v8  ;;  %1210 = vmatprep.subr.mxu0 %v1360_v49  ;;  %v3486_v8 = vsub.f32 %v2562_v29, %v2873_v48  ;;  %v1138_v49 = vmul.f32 1.442695, %v1035_v43  ;;  %v1030_v29 = vsub.f32 %v2781_v36, %v2967_v11  ;;  %p1470_p8 = por %p1469_p7, %p1468_p6 }
 0x146   :  { %v1364_v16 = vpop.eup %1363  ;;  %1389 = vpow2.f32 %v1180_v14  ;;  %1211 = vmatpush1.msra.mxu0 %v1362_v28 }
 0x147   :  { %v1366_v56 = vpop.eup %1365  ;;  %1391 = vpow2.f32 %v1178_v20  ;;  %1212 = vmatprep.subr.mxu0 %v1364_v16  ;;  %v1142_v51 = vmul.f32 1.442695, %v3486_v8  ;;  %v1031_v20 = vsub.f32 %v3487_v59, %v2873_v48  ;;  %v3489_v16 = vsub.f32 %v3448_v41, %v2873_v48  ;;  %p1471_p9 = pnand %p1470_p8, %p1464_p5 }
 0x148   :  { %v1368_v35 = vpop.eup %1367  ;;  %1393 = vpow2.f32 %v1176_v22  ;;  %1213 = vmatpush1.msra.mxu0 %v1366_v56  ;;  %v1136_v22 = vmul.f32 1.442695, %v1034_v24  ;;  %v1028_v56 = vsub.f32 %v2820_v45, %v2967_v11 }
 0x149   :  { %v1370_v38 = vpop.eup %1369  ;;  %1395 = vpow2.f32 %v1174_v23  ;;  %1214 = vmatprep.subr.mxu0 %v1368_v35  ;;  %v1029_v23 = vsub.f32 %v3488_v15, %v2873_v48  ;;  %v1134_v55 = vmul.f32 1.442695, %v3489_v16  ;;  %v1130_v35 = vmul.f32 1.442695, %v1031_v20 }
 0x14a   :  { %v1372_v5 = vpop.eup %1371  ;;  %1397 = vpow2.f32 %v1172_v3  ;;  %1215 = vmatpush1.msra.mxu0 %v1370_v38 }
 0x14b   :  { %v1374_v46 = vpop.eup %1373  ;;  %1399 = vpow2.f32 %v1170_v33  ;;  %1216 = vmatprep.subr.mxu0 %v1372_v5  ;;  %v1132_v33 = vmul.f32 1.442695, %v1032_v7  ;;  %v1126_v48 = vmul.f32 1.442695, %v1029_v23 }
 0x14c   :  { %v1376_v25 = vpop.eup %1375  ;;  %1401 = vpow2.f32 %v1168_v6  ;;  %1217 = vmatpush1.msra.mxu0 %v1374_v46  ;;  %v1128_v6 = vmul.f32 1.442695, %v1030_v29 }
 0x14d   :  { %v1378_v40 = vpop.eup %1377  ;;  %1403 = vpow2.f32 %v1166_v54  ;;  %1218 = vmatprep.subr.mxu0 %v1376_v25  ;;  %v1124_v54 = vmul.f32 1.442695, %v1028_v56 }
 0x14e   :  { %v1380_v63 = vpop.eup %1379  ;;  %1405 = vpow2.f32 %v1164_v9  ;;  %1219 = vmatpush1.msra.mxu0 %v1378_v40 }
 0x14f   :  { %v1382_v37 = vpop.eup %1381  ;;  %1407 = vpow2.f32 %v1162_v2  ;;  %1220 = vmatprep.subr.mxu0 %v1380_v63 }
 0x150   :  { %v1384_v34 = vpop.eup %1383  ;;  %1409 = vpow2.f32 %v1160_v18  ;;  %1221 = vmatpush1.msra.mxu0 %v1382_v37 }
 0x151   :  { %v1386_v17 = vpop.eup %1385  ;;  %1411 = vpow2.f32 %v1158_v44  ;;  %1222 = vmatprep.subr.mxu0 %v1384_v34 }
 0x152   :  { %v1388_v12 = vpop.eup %1387  ;;  %1413 = vpow2.f32 %v1156_v58  ;;  %1223 = vmatpush2.msra.mxu0 %v1386_v17 }
 0x153   :  { %v1390_v52 = vpop.eup %1389  ;;  %1415 = vpow2.f32 %v1154_v26  ;;  %1224 = vmatprep.subr.mxu0 %v1388_v12 }
 0x154   :  { %v1392_v60 = vpop.eup %1391  ;;  %1417 = vpow2.f32 %v1152_v27  ;;  %1225 = vmatpush2.msra.mxu0 %v1390_v52 }
 0x155   :  { %v1394_v10 = vpop.eup %1393  ;;  %1419 = vpow2.f32 %v1150_v13  ;;  %1226 = vmatprep.subr.mxu0 %v1392_v60  ;;  %v1278_v13 = vunpack.c.l.s4 %v1489_v61  ;;  %v3490_v60 = vld [vmem:[#allocation8_spill] sm:$0xff] }
 0x156   :  { %v1396_v14 = vpop.eup %1395  ;;  %1421 = vpow2.f32 %v1148_v30  ;;  %1227 = vmatpush2.msra.mxu0 %v1394_v10 }
 0x157   :  { %v1398_v19 = vpop.eup %1397  ;;  %1423 = vpow2.f32 %v1146_v50  ;;  %1228 = vmatprep.subr.mxu0 %v1396_v14  ;;  %v1279_v30 = vunpack.c.0.s8 %v1278_v13 }
 0x158   :  { %v1400_v21 = vpop.eup %1399  ;;  %1425 = vpow2.f32 %v1144_v57  ;;  %1229 = vmatpush2.msra.mxu0 %v1398_v19 }
 0x159   :  { %v1402_v28 = vpop.eup %1401  ;;  %1427 = vpow2.f32 %v1142_v51  ;;  %1230 = vmatprep.subr.mxu0 %v1400_v21  ;;  %v1282_v24 = vsub.s32 %v1279_v30, %v3490_v60  ;;  %v3491_v51 = vlaneseq }
 0x15a   :  { %v1404_v3 = vpop.eup %1403  ;;  %1429 = vpow2.f32 %v1140_v1  ;;  %1231 = vmatpush2.msra.mxu0 %v1402_v28 }
 0x15b   :  { %v1406_v36 = vpop.eup %1405  ;;  %1431 = vpow2.f32 %v1138_v49  ;;  %1232 = vmatprep.subr.mxu0 %v1404_v3  ;;  %vm1295_vm0 = vcmp.lt.s32.totalorder %v3491_v51, 256 }
 0x15c   :  { %v1408_v31 = vpop.eup %1407  ;;  %1433 = vpow2.f32 %v1136_v22  ;;  %1233 = vmatpush2.msra.mxu0 %v1406_v36 }
 0x15d   :  { %v1410_v38 = vpop.eup %1409  ;;  %1435 = vpow2.f32 %v1134_v55  ;;  %1234 = vmatprep.subr.mxu0 %v1408_v31 }
 0x15e   :  { %v1412_v41 = vpop.eup %1411  ;;  %1437 = vpow2.f32 %v1132_v33  ;;  %1235 = vmatpush2.msra.mxu0 %v1410_v38 }
 0x15f   :  { %v1414_v45 = vpop.eup %1413  ;;  %1439 = vpow2.f32 %v1130_v35  ;;  %1236 = vmatprep.subr.mxu0 %v1412_v41 }
 0x160   :  { %v1416_v11 = vpop.eup %1415  ;;  %1441 = vpow2.f32 %v1128_v6  ;;  %1237 = vmatpush2.msra.mxu0 %v1414_v45 }
 0x161   :  { %v1418_v5 = vpop.eup %1417  ;;  %1443 = vpow2.f32 %v1126_v48  ;;  %1238 = vmatprep.subr.mxu0 %v1416_v11 }
 0x162   :  { %v1420_v0 = vpop.eup %1419  ;;  %1445 = vpow2.f32 %v1124_v54  ;;  %1239 = vmatpush2.msra.mxu0 %v1418_v5 }
 0x163   :  { %v1422_v9 = vpop.eup %1421  ;;  %1240 = vmatprep.subr.mxu0 %v1420_v0 }
 0x164   :  { %v1424_v46 = vpop.eup %1423  ;;  %1241 = vmatpush2.msra.mxu0 %v1422_v9 }
 0x165   :  { %v1426_v2 = vpop.eup %1425  ;;  %1242 = vmatprep.subr.mxu0 %v1424_v46 }
 0x166   :  { %v1428_v25 = vpop.eup %1427  ;;  %1243 = vmatpush2.msra.mxu0 %v1426_v2 }
 0x167   :  { %v1430_v53 = vpop.eup %1429  ;;  %1244 = vmatprep.subr.mxu0 %v1428_v25 }
 0x168   :  { %v1432_v18 = vpop.eup %1431  ;;  %1245 = vmatpush2.msra.mxu0 %v1430_v53 }
 0x169   :  { %v1434_v40 = vpop.eup %1433  ;;  %1246 = vmatprep.subr.mxu0 %v1432_v18 }
 0x16a   :  { %v1436_v44 = vpop.eup %1435  ;;  %1247 = vmatpush2.msra.mxu0 %v1434_v40 }
 0x16b   :  { %v1438_v63 = vpop.eup %1437  ;;  %1248 = vmatprep.subr.mxu0 %v1436_v44 }
 0x16c   :  { %v1440_v62 = vpop.eup %1439  ;;  %1249 = vmatpush2.msra.mxu0 %v1438_v63 }
 0x16d   :  { %v1442_v58 = vpop.eup %1441  ;;  %1250 = vmatprep.subr.mxu0 %v1440_v62 }
 0x16e   :  { %v1444_v37 = vpop.eup %1443  ;;  %1251 = vmatpush2.msra.mxu0 %v1442_v58 }
 0x16f   :  { %v1446_v26 = vpop.eup %1445  ;;  %1252 = vmatprep.subr.mxu0 %v1444_v37 }
 0x170   :  { %1253 = vmatpush2.msra.mxu0 %v1446_v26 }
 0x171   :  { %1255 = vmatmul.mubr.f32.vlgmr.msra.gmra.mxu0 %v1188_v32 }
 0x231   :  { %v1256_v34 = vpop.f32.mrf.mxu0 }
 0x232   :  { %v1263_v42 = vrot.slane %v1256_v34, 7 }
 0x233   :  { %v1258_v27 = vpop.f32.mrf.mxu0 }
 0x234   :  { %1447 = vrcp.f32 %v1263_v42  ;;  %v1264_v17 = vrot.slane %v1258_v27, 7 }
 0x236   :  { %1449 = vrcp.f32 %v1264_v17 }
 0x241   :  { %v1448_v12 = vpop.eup %1447 }
 0x242   :  { %v1268_v47 = vmul.f32 %v1448_v12, %v1256_v34 }
 0x243   :  { %v1450_v52 = vpop.eup %1449 }
 0x244   :  { %v1270_v43 = vmul.f32 %v1450_v52, %v1258_v27  ;;  %v1272_v39 = vadd.f32 %v1271_v4, %v1268_v47 }
 0x246   :  { %v1273_v50 = vadd.f32 %v1271_v4, %v1270_v43 }
 0x248   :  { %v1276_v57 = vcombine.low %v1272_v39, %v1273_v50 }
 0x24a   :  { %v1283_v10 = vrot.slane %v1276_v57, %v1282_v24 }
 0x24c   :  { %v1284_v8 = vcombine.high %v1283_v10, %v1283_v10 }
 0x24e   :  { %v1291_v14 = vrot.slane %v1284_v8, %v1282_v24 }
 0x250   :  { %1297 = vst.msk [vmem:[#allocation4] sm:$0x3] %vm1295_vm0, %v1291_v14 }
 0x251   :  { %1474 = shalt.err (!%p1471_p9)
}
 0x252   :  { %1307 = dma.vmem_to_hbm [thread:$0]  %s1305_s19, 32, %s3119_s5, [#allocation5]  }
 0x253   :  { %1485 = dma.done.wait [#allocation5], 32  }
 0x254   :  { %1486 = vsyncadd [#allocation5], 4294967264 }
 0x255   :  { %1311 = vsyncpa [#allocation5], 1 }

</bundles_post_ra>
